<compile_context>
chip_gen: v7x
topology: tpu7x:2x2x1
jax: 0.10.0
libtpu: 0.0.40
codegen_flags: <defaults>
</compile_context>

<pallas_src>
import jax
import jax.numpy as jnp
from jax import lax
from jax.experimental import pallas as pl
from jax.experimental.pallas import tpu as pltpu

Ninput = 9
Nhidden = 416

H_FUSED = 2 * Nhidden        # 832: both branch hidden layers in one GEMM
H_PAD = 896                  # 7 * 128 (was 1024) -> less hidden traffic / VPU work
BIAS_SLOT = H_FUSED          # padded hidden channel that is constantly 1 after ReLU
HC = 128                     # hidden chunk processed per inner iteration
N_CHUNKS = H_PAD // HC       # 7 chunks, static -> fully unrolled


def ensemble_kernel(w1_ref, b1_ref, w2_ref, x_ref, o_ref):
    # w1: [H_PAD, K], b1/w2: [H_PAD, 1], x: [TB, K], o: [1, TB]
    x = x_ref[...]                                   # load the batch tile once
    acc = jnp.zeros(o_ref.shape, jnp.float32)        # [1, TB] accumulator

    for c in range(N_CHUNKS):                        # static Python loop (unrolled)
        lo = c * HC
        w1c = w1_ref[lo:lo + HC, :]                  # [HC, K]   static slices
        b1c = b1_ref[lo:lo + HC, :]                  # [HC, 1]
        w2c = w2_ref[lo:lo + HC, :]                  # [HC, 1]
        # Trans-B matmul: contract K of both operands, [HC, K] x [TB, K] -> [HC, TB].
        # Batch stays on the lane axis; the small RHS transpose lands on the idle XLU.
        h = lax.dot_general(w1c, x, (((1,), (1,)), ((), ())),
                            preferred_element_type=jnp.float32)
        # Bias + ReLU (Dropout = identity in eval) + w2-weighted sublane reduction,
        # fused as one consumer pass; the full [H_PAD, TB] activation never exists.
        acc = acc + jnp.sum(jnp.maximum(h + b1c, 0.0) * w2c, axis=0, keepdims=True)

    o_ref[...] = acc.astype(o_ref.dtype)


def fuse_params(params):
    """Fold both branches + classifier into one padded MLP (host side, once, exact)."""
    (w1a, b1a, w2a, b2a, w1b, b1b, w2b, b2b, wc, bc) = params

    w1f = jnp.concatenate([w1a, w1b], axis=1)                          # [9, 832]
    b1f = jnp.concatenate([b1a, b1b], axis=1)                          # [1, 832]
    w2f = jnp.concatenate([w2a * wc[0, 0], w2b * wc[1, 0]], axis=0)    # [832, 1]
    bf = (b2a * wc[0, 0] + b2b * wc[1, 0] + bc)[0, 0]                  # scalar

    # First layer stored [H_PAD, K] (natural MXU LHS orientation for the chunked dots).
    w1k = jnp.zeros((H_PAD, Ninput), jnp.float32).at[:H_FUSED, :].set(w1f.T)

    # First-layer bias as a resident column vector; BIAS_SLOT channel == 1 after ReLU.
    b1k = jnp.zeros((H_PAD, 1), jnp.float32).at[:H_FUSED, 0].set(b1f[0])
    b1k = b1k.at[BIAS_SLOT, 0].set(1.0)

    # Second layer (classifier-scaled); final bias multiplies the constant-1 channel.
    w2k = jnp.zeros((H_PAD, 1), jnp.float32).at[:H_FUSED, 0].set(w2f[:, 0])
    w2k = w2k.at[BIAS_SLOT, 0].set(bf)
    return w1k, b1k, w2k


def my_ensemble_forward(x, fused, tb=2048):
    """tb is a batch-tile cap: 2048 stays well under the v7x scoped-VMEM default; on
    v5e/v6e (128 MiB VMEM) callers may raise it (e.g. 4096) to amortize per-step cost."""
    w1k, b1k, w2k = fused
    B = x.shape[0]

    if B <= tb:
        tb = B                                      # single full-extent tile
    else:
        # Balance the grid steps (even work per v7x TensorCore) and keep tb a multiple
        # of 128 so BlockSpecs satisfy the (8, 128) rule.
        steps = pl.cdiv(B, tb)
        tb = ((pl.cdiv(B, steps) + 127) // 128) * 128

    grid = (pl.cdiv(B, tb),)

    out = pl.pallas_call(
        ensemble_kernel,
        out_shape=jax.ShapeDtypeStruct((1, B), jnp.float32),
        grid_spec=pltpu.PrefetchScalarGridSpec(
            num_scalar_prefetch=0,
            grid=grid,
            in_specs=[
                pl.BlockSpec((H_PAD, Ninput), lambda i: (0, 0)),  # resident weights
                pl.BlockSpec((H_PAD, 1), lambda i: (0, 0)),       # resident bias
                pl.BlockSpec((H_PAD, 1), lambda i: (0, 0)),       # resident w2 (+bf slot)
                pl.BlockSpec((tb, Ninput), lambda i: (i, 0)),     # x tiles: pipelined
            ],
            out_specs=pl.BlockSpec((1, tb), lambda i: (0, i)),    # lane-dense out tiles
        ),
        compiler_params=pltpu.CompilerParams(
            dimension_semantics=("parallel",),      # shard batch tiles over v7x TCs
            vmem_limit_bytes=32 * 1024 * 1024,
        ),
    )(w1k, b1k, w2k, x)

    return out.reshape(B, 1)      # (1, B) -> (B, 1): pure reshape, no transpose


def init_params(key):
    """Deterministic init. Weights stored as [in, out]; biases as 2-D [1, out]."""
    ks = jax.random.split(key, 10)

    def lin(kw, kb, fan_in, fan_out):
        # PyTorch-style uniform(-1/sqrt(fan_in), 1/sqrt(fan_in))
        bound = 1.0 / jnp.sqrt(jnp.float32(fan_in))
        w = jax.random.uniform(kw, (fan_in, fan_out), jnp.float32, -bound, bound)
        b = jax.random.uniform(kb, (1, fan_out), jnp.float32, -bound, bound)
        return w, b

    w1a, b1a = lin(ks[0], ks[1], Ninput, Nhidden)
    w2a, b2a = lin(ks[2], ks[3], Nhidden, 1)
    w1b, b1b = lin(ks[4], ks[5], Ninput, Nhidden)
    w2b, b2b = lin(ks[6], ks[7], Nhidden, 1)
    wc, bc = lin(ks[8], ks[9], 2, 1)
    return (w1a, b1a, w2a, b2a, w1b, b1b, w2b, b2b, wc, bc)


def reference_forward(x, params):
    """Unfused reference matching the PyTorch forward (eval mode)."""
    (w1a, b1a, w2a, b2a, w1b, b1b, w2b, b2b, wc, bc) = params
    x1 = jnp.maximum(x @ w1a + b1a, 0.0) @ w2a + b2a
    x2 = jnp.maximum(x @ w1b + b1b, 0.0) @ w2b + b2b
    cat = jnp.concatenate([x1, x2], axis=1)
    return cat @ wc + bc


if __name__ == "__main__":
    key = jax.random.PRNGKey(0)
    k_x, k_x2, k_p = jax.random.split(key, 3)

    params = init_params(k_p)
    fused = fuse_params(params)

    # Small batch (single full-extent tile).
    B = 8
    x = jax.random.normal(k_x, (B, Ninput), dtype=jnp.float32)
    out = jax.block_until_ready(my_ensemble_forward(x, fused))
    ref = reference_forward(x, params)
    assert out.shape == (B, 1), out.shape
    assert jnp.allclose(out, ref, atol=1e-4, rtol=1e-4), (out, ref)

    # Larger batch: exercises the balanced pipelined grid and a partial last tile
    # (B=2500, cap 2048 -> two tiles of 1280, second one partial).
    B2 = 2500
    x2 = jax.random.normal(k_x2, (B2, Ninput), dtype=jnp.float32)
    out2 = jax.block_until_ready(my_ensemble_forward(x2, fused))
    ref2 = reference_forward(x2, params)
    assert out2.shape == (B2, 1), out2.shape
    assert jnp.allclose(out2, ref2, atol=1e-4, rtol=1e-4)

    print("KERNEL_OK")
</pallas_src>

<mosaic_0001>
module attributes {stable_mosaic.version = 11 : i64} {
  func.func @ensemble_kernel(%arg0: i32, %arg1: memref<896x9xf32, #tpu.memory_space<vmem>>, %arg2: memref<896x1xf32, #tpu.memory_space<vmem>>, %arg3: memref<896x1xf32, #tpu.memory_space<vmem>>, %arg4: memref<8x9xf32, #tpu.memory_space<vmem>>, %arg5: memref<1x8xf32, #tpu.memory_space<vmem>>) attributes {dimension_semantics = [#tpu.dimension_semantics<parallel>], iteration_bounds = array<i64: 1>, scalar_prefetch = 0 : i64, scratch_operands = 0 : i64, tpu.core_type = #tpu.core_type<tc>, window_params = [{pipeline_mode = #tpu.pipeline_mode<synchronous>, transform_indices = @transform_0, window_bounds = array<i64: 896, 9>}, {pipeline_mode = #tpu.pipeline_mode<synchronous>, transform_indices = @transform_1, window_bounds = array<i64: 896, 1>}, {pipeline_mode = #tpu.pipeline_mode<synchronous>, transform_indices = @transform_2, window_bounds = array<i64: 896, 1>}, {transform_indices = @transform_3, window_bounds = array<i64: 8, 9>}, {transform_indices = @transform_4, window_bounds = array<i64: 1, 8>}]} {
    %c0 = arith.constant 0 : index
    %c0_0 = arith.constant 0 : index
    %0 = vector.load %arg4[%c0, %c0_0] : memref<8x9xf32, #tpu.memory_space<vmem>>, vector<8x9xf32>
    %cst = arith.constant 0.000000e+00 : f32
    %1 = vector.broadcast %cst : f32 to vector<1x8xf32>
    %c0_1 = arith.constant 0 : index
    %c0_2 = arith.constant 0 : index
    %2 = vector.load %arg1[%c0_1, %c0_2] : memref<896x9xf32, #tpu.memory_space<vmem>>, vector<128x9xf32>
    %c0_3 = arith.constant 0 : index
    %c0_4 = arith.constant 0 : index
    %3 = vector.load %arg2[%c0_3, %c0_4] : memref<896x1xf32, #tpu.memory_space<vmem>>, vector<128x1xf32>
    %c0_5 = arith.constant 0 : index
    %c0_6 = arith.constant 0 : index
    %4 = vector.load %arg3[%c0_5, %c0_6] : memref<896x1xf32, #tpu.memory_space<vmem>>, vector<128x1xf32>
    %cst_7 = arith.constant dense<0.000000e+00> : vector<128x8xf32>
    %5 = tpu.matmul %2, %0, %cst_7 {dimension_numbers = #tpu.dot_dimension_numbers<[1], [1], [0], [0], [0, 0, 1, 0], [], []>} : vector<128x9xf32>, vector<8x9xf32>, vector<128x8xf32> -> vector<128x8xf32>
    %6 = vector.broadcast %3 : vector<128x1xf32> to vector<128x8xf32>
    %7 = arith.addf %5, %6 : vector<128x8xf32>
    %cst_8 = arith.constant 0.000000e+00 : f32
    %8 = vector.broadcast %cst_8 : f32 to vector<128x8xf32>
    %9 = arith.maximumf %7, %8 : vector<128x8xf32>
    %10 = vector.broadcast %4 : vector<128x1xf32> to vector<128x8xf32>
    %11 = arith.mulf %9, %10 : vector<128x8xf32>
    %cst_9 = arith.constant dense<0.000000e+00> : vector<8xf32>
    %12 = vector.multi_reduction <add>, %11, %cst_9 [0] : vector<128x8xf32> to vector<8xf32>
    %13 = vector.shape_cast %12 : vector<8xf32> to vector<1x8xf32>
    %14 = arith.addf %1, %13 : vector<1x8xf32>
    %c128 = arith.constant 128 : index
    %c0_10 = arith.constant 0 : index
    %15 = vector.load %arg1[%c128, %c0_10] : memref<896x9xf32, #tpu.memory_space<vmem>>, vector<128x9xf32>
    %c128_11 = arith.constant 128 : index
    %c0_12 = arith.constant 0 : index
    %16 = vector.load %arg2[%c128_11, %c0_12] : memref<896x1xf32, #tpu.memory_space<vmem>>, vector<128x1xf32>
    %c128_13 = arith.constant 128 : index
    %c0_14 = arith.constant 0 : index
    %17 = vector.load %arg3[%c128_13, %c0_14] : memref<896x1xf32, #tpu.memory_space<vmem>>, vector<128x1xf32>
    %cst_15 = arith.constant dense<0.000000e+00> : vector<128x8xf32>
    %18 = tpu.matmul %15, %0, %cst_15 {dimension_numbers = #tpu.dot_dimension_numbers<[1], [1], [0], [0], [0, 0, 1, 0], [], []>} : vector<128x9xf32>, vector<8x9xf32>, vector<128x8xf32> -> vector<128x8xf32>
    %19 = vector.broadcast %16 : vector<128x1xf32> to vector<128x8xf32>
    %20 = arith.addf %18, %19 : vector<128x8xf32>
    %cst_16 = arith.constant 0.000000e+00 : f32
    %21 = vector.broadcast %cst_16 : f32 to vector<128x8xf32>
    %22 = arith.maximumf %20, %21 : vector<128x8xf32>
    %23 = vector.broadcast %17 : vector<128x1xf32> to vector<128x8xf32>
    %24 = arith.mulf %22, %23 : vector<128x8xf32>
    %cst_17 = arith.constant dense<0.000000e+00> : vector<8xf32>
    %25 = vector.multi_reduction <add>, %24, %cst_17 [0] : vector<128x8xf32> to vector<8xf32>
    %26 = vector.shape_cast %25 : vector<8xf32> to vector<1x8xf32>
    %27 = arith.addf %14, %26 : vector<1x8xf32>
    %c256 = arith.constant 256 : index
    %c0_18 = arith.constant 0 : index
    %28 = vector.load %arg1[%c256, %c0_18] : memref<896x9xf32, #tpu.memory_space<vmem>>, vector<128x9xf32>
    %c256_19 = arith.constant 256 : index
    %c0_20 = arith.constant 0 : index
    %29 = vector.load %arg2[%c256_19, %c0_20] : memref<896x1xf32, #tpu.memory_space<vmem>>, vector<128x1xf32>
    %c256_21 = arith.constant 256 : index
    %c0_22 = arith.constant 0 : index
    %30 = vector.load %arg3[%c256_21, %c0_22] : memref<896x1xf32, #tpu.memory_space<vmem>>, vector<128x1xf32>
    %cst_23 = arith.constant dense<0.000000e+00> : vector<128x8xf32>
    %31 = tpu.matmul %28, %0, %cst_23 {dimension_numbers = #tpu.dot_dimension_numbers<[1], [1], [0], [0], [0, 0, 1, 0], [], []>} : vector<128x9xf32>, vector<8x9xf32>, vector<128x8xf32> -> vector<128x8xf32>
    %32 = vector.broadcast %29 : vector<128x1xf32> to vector<128x8xf32>
    %33 = arith.addf %31, %32 : vector<128x8xf32>
    %cst_24 = arith.constant 0.000000e+00 : f32
    %34 = vector.broadcast %cst_24 : f32 to vector<128x8xf32>
    %35 = arith.maximumf %33, %34 : vector<128x8xf32>
    %36 = vector.broadcast %30 : vector<128x1xf32> to vector<128x8xf32>
    %37 = arith.mulf %35, %36 : vector<128x8xf32>
    %cst_25 = arith.constant dense<0.000000e+00> : vector<8xf32>
    %38 = vector.multi_reduction <add>, %37, %cst_25 [0] : vector<128x8xf32> to vector<8xf32>
    %39 = vector.shape_cast %38 : vector<8xf32> to vector<1x8xf32>
    %40 = arith.addf %27, %39 : vector<1x8xf32>
    %c384 = arith.constant 384 : index
    %c0_26 = arith.constant 0 : index
    %41 = vector.load %arg1[%c384, %c0_26] : memref<896x9xf32, #tpu.memory_space<vmem>>, vector<128x9xf32>
    %c384_27 = arith.constant 384 : index
    %c0_28 = arith.constant 0 : index
    %42 = vector.load %arg2[%c384_27, %c0_28] : memref<896x1xf32, #tpu.memory_space<vmem>>, vector<128x1xf32>
    %c384_29 = arith.constant 384 : index
    %c0_30 = arith.constant 0 : index
    %43 = vector.load %arg3[%c384_29, %c0_30] : memref<896x1xf32, #tpu.memory_space<vmem>>, vector<128x1xf32>
    %cst_31 = arith.constant dense<0.000000e+00> : vector<128x8xf32>
    %44 = tpu.matmul %41, %0, %cst_31 {dimension_numbers = #tpu.dot_dimension_numbers<[1], [1], [0], [0], [0, 0, 1, 0], [], []>} : vector<128x9xf32>, vector<8x9xf32>, vector<128x8xf32> -> vector<128x8xf32>
    %45 = vector.broadcast %42 : vector<128x1xf32> to vector<128x8xf32>
    %46 = arith.addf %44, %45 : vector<128x8xf32>
    %cst_32 = arith.constant 0.000000e+00 : f32
    %47 = vector.broadcast %cst_32 : f32 to vector<128x8xf32>
    %48 = arith.maximumf %46, %47 : vector<128x8xf32>
    %49 = vector.broadcast %43 : vector<128x1xf32> to vector<128x8xf32>
    %50 = arith.mulf %48, %49 : vector<128x8xf32>
    %cst_33 = arith.constant dense<0.000000e+00> : vector<8xf32>
    %51 = vector.multi_reduction <add>, %50, %cst_33 [0] : vector<128x8xf32> to vector<8xf32>
    %52 = vector.shape_cast %51 : vector<8xf32> to vector<1x8xf32>
    %53 = arith.addf %40, %52 : vector<1x8xf32>
    %c512 = arith.constant 512 : index
    %c0_34 = arith.constant 0 : index
    %54 = vector.load %arg1[%c512, %c0_34] : memref<896x9xf32, #tpu.memory_space<vmem>>, vector<128x9xf32>
    %c512_35 = arith.constant 512 : index
    %c0_36 = arith.constant 0 : index
    %55 = vector.load %arg2[%c512_35, %c0_36] : memref<896x1xf32, #tpu.memory_space<vmem>>, vector<128x1xf32>
    %c512_37 = arith.constant 512 : index
    %c0_38 = arith.constant 0 : index
    %56 = vector.load %arg3[%c512_37, %c0_38] : memref<896x1xf32, #tpu.memory_space<vmem>>, vector<128x1xf32>
    %cst_39 = arith.constant dense<0.000000e+00> : vector<128x8xf32>
    %57 = tpu.matmul %54, %0, %cst_39 {dimension_numbers = #tpu.dot_dimension_numbers<[1], [1], [0], [0], [0, 0, 1, 0], [], []>} : vector<128x9xf32>, vector<8x9xf32>, vector<128x8xf32> -> vector<128x8xf32>
    %58 = vector.broadcast %55 : vector<128x1xf32> to vector<128x8xf32>
    %59 = arith.addf %57, %58 : vector<128x8xf32>
    %cst_40 = arith.constant 0.000000e+00 : f32
    %60 = vector.broadcast %cst_40 : f32 to vector<128x8xf32>
    %61 = arith.maximumf %59, %60 : vector<128x8xf32>
    %62 = vector.broadcast %56 : vector<128x1xf32> to vector<128x8xf32>
    %63 = arith.mulf %61, %62 : vector<128x8xf32>
    %cst_41 = arith.constant dense<0.000000e+00> : vector<8xf32>
    %64 = vector.multi_reduction <add>, %63, %cst_41 [0] : vector<128x8xf32> to vector<8xf32>
    %65 = vector.shape_cast %64 : vector<8xf32> to vector<1x8xf32>
    %66 = arith.addf %53, %65 : vector<1x8xf32>
    %c640 = arith.constant 640 : index
    %c0_42 = arith.constant 0 : index
    %67 = vector.load %arg1[%c640, %c0_42] : memref<896x9xf32, #tpu.memory_space<vmem>>, vector<128x9xf32>
    %c640_43 = arith.constant 640 : index
    %c0_44 = arith.constant 0 : index
    %68 = vector.load %arg2[%c640_43, %c0_44] : memref<896x1xf32, #tpu.memory_space<vmem>>, vector<128x1xf32>
    %c640_45 = arith.constant 640 : index
    %c0_46 = arith.constant 0 : index
    %69 = vector.load %arg3[%c640_45, %c0_46] : memref<896x1xf32, #tpu.memory_space<vmem>>, vector<128x1xf32>
    %cst_47 = arith.constant dense<0.000000e+00> : vector<128x8xf32>
    %70 = tpu.matmul %67, %0, %cst_47 {dimension_numbers = #tpu.dot_dimension_numbers<[1], [1], [0], [0], [0, 0, 1, 0], [], []>} : vector<128x9xf32>, vector<8x9xf32>, vector<128x8xf32> -> vector<128x8xf32>
    %71 = vector.broadcast %68 : vector<128x1xf32> to vector<128x8xf32>
    %72 = arith.addf %70, %71 : vector<128x8xf32>
    %cst_48 = arith.constant 0.000000e+00 : f32
    %73 = vector.broadcast %cst_48 : f32 to vector<128x8xf32>
    %74 = arith.maximumf %72, %73 : vector<128x8xf32>
    %75 = vector.broadcast %69 : vector<128x1xf32> to vector<128x8xf32>
    %76 = arith.mulf %74, %75 : vector<128x8xf32>
    %cst_49 = arith.constant dense<0.000000e+00> : vector<8xf32>
    %77 = vector.multi_reduction <add>, %76, %cst_49 [0] : vector<128x8xf32> to vector<8xf32>
    %78 = vector.shape_cast %77 : vector<8xf32> to vector<1x8xf32>
    %79 = arith.addf %66, %78 : vector<1x8xf32>
    %c768 = arith.constant 768 : index
    %c0_50 = arith.constant 0 : index
    %80 = vector.load %arg1[%c768, %c0_50] : memref<896x9xf32, #tpu.memory_space<vmem>>, vector<128x9xf32>
    %c768_51 = arith.constant 768 : index
    %c0_52 = arith.constant 0 : index
    %81 = vector.load %arg2[%c768_51, %c0_52] : memref<896x1xf32, #tpu.memory_space<vmem>>, vector<128x1xf32>
    %c768_53 = arith.constant 768 : index
    %c0_54 = arith.constant 0 : index
    %82 = vector.load %arg3[%c768_53, %c0_54] : memref<896x1xf32, #tpu.memory_space<vmem>>, vector<128x1xf32>
    %cst_55 = arith.constant dense<0.000000e+00> : vector<128x8xf32>
    %83 = tpu.matmul %80, %0, %cst_55 {dimension_numbers = #tpu.dot_dimension_numbers<[1], [1], [0], [0], [0, 0, 1, 0], [], []>} : vector<128x9xf32>, vector<8x9xf32>, vector<128x8xf32> -> vector<128x8xf32>
    %84 = vector.broadcast %81 : vector<128x1xf32> to vector<128x8xf32>
    %85 = arith.addf %83, %84 : vector<128x8xf32>
    %cst_56 = arith.constant 0.000000e+00 : f32
    %86 = vector.broadcast %cst_56 : f32 to vector<128x8xf32>
    %87 = arith.maximumf %85, %86 : vector<128x8xf32>
    %88 = vector.broadcast %82 : vector<128x1xf32> to vector<128x8xf32>
    %89 = arith.mulf %87, %88 : vector<128x8xf32>
    %cst_57 = arith.constant dense<0.000000e+00> : vector<8xf32>
    %90 = vector.multi_reduction <add>, %89, %cst_57 [0] : vector<128x8xf32> to vector<8xf32>
    %91 = vector.shape_cast %90 : vector<8xf32> to vector<1x8xf32>
    %92 = arith.addf %79, %91 : vector<1x8xf32>
    %c0_58 = arith.constant 0 : index
    %c0_59 = arith.constant 0 : index
    %93 = vector.load %arg5[%c0_58, %c0_59] : memref<1x8xf32, #tpu.memory_space<vmem>>, vector<1x8xf32>
    tpu.vector_store %arg5[%c0_58, %c0_59], %92 {strides = array<i32>} : memref<1x8xf32, #tpu.memory_space<vmem>>, vector<1x8xf32>,
    return
  }
  func.func @transform_0(%arg0: i32) -> (i32, i32) {
    %c0_i32 = arith.constant 0 : i32
    %c0_i32_0 = arith.constant 0 : i32
    %c0_i32_1 = arith.constant 0 : i32
    return %c0_i32, %c0_i32_0 : i32, i32
  }
  func.func @transform_1(%arg0: i32) -> (i32, i32) {
    %c0_i32 = arith.constant 0 : i32
    %c0_i32_0 = arith.constant 0 : i32
    %c0_i32_1 = arith.constant 0 : i32
    return %c0_i32, %c0_i32_0 : i32, i32
  }
  func.func @transform_2(%arg0: i32) -> (i32, i32) {
    %c0_i32 = arith.constant 0 : i32
    %c0_i32_0 = arith.constant 0 : i32
    %c0_i32_1 = arith.constant 0 : i32
    return %c0_i32, %c0_i32_0 : i32, i32
  }
  func.func @transform_3(%arg0: i32) -> (i32, i32) {
    %c0_i32 = arith.constant 0 : i32
    %c0_i32_0 = arith.constant 0 : i32
    return %arg0, %c0_i32 : i32, i32
  }
  func.func @transform_4(%arg0: i32) -> (i32, i32) {
    %c0_i32 = arith.constant 0 : i32
    %c0_i32_0 = arith.constant 0 : i32
    return %c0_i32, %arg0 : i32, i32
  }
}

</mosaic_0001>

<bundles_post_ra>
// kernel: tpu_custom_call.1
= control target key start
LH: loop header
LB: loop body
LE: loop exit
PB: predicated region body
PF: predicated region fallthrough
CT: control target
= control target key end

     0   :  { %vm147_vm0 = vcmask 72704   ;;  %v3787_v3 = vmov 0   ;;  %s5716_s0 = inlined_call_operand.vmem [shape: f32[896,9], index: 0, kind: input, shape index: {}]   ;;  %s5717_s1 = inlined_call_operand.vmem [shape: f32[896,1], index: 1, kind: input, shape index: {}]   ;;  %s5718_s2 = inlined_call_operand.vmem [shape: f32[896,1], index: 2, kind: input, shape index: {}]   ;;  %s5719_s3 = inlined_call_operand.vmem [shape: f32[8,9], index: 3, kind: input, shape index: {}]   ;;  %s5720_s4 = inlined_call_operand.hbm [shape: f32[1,8], index: 4, kind: output, shape index: {}]  }
   0x1   :  { %v3817_v0 = vld [vmem:[%s5719_s3] sm:$0xff]  ;;  %v37_v1 = vld [vmem:[%s5717_s1 + $0x10] sm:$0xff]  ;;  %3762 = vset.pattern.permute.xlu1 %v3787_v3  ;;  %3761 = vset.pattern.permute.xlu0 %v3787_v3  ;;  %v20_v6 = vld [vmem:[%s5716_s0 + $0x8] sm:$0xff] }
   0x2   :  { %v35_v2 = vld [vmem:[%s5717_s1] sm:$0xff]  ;;  %3575 = vmatprep.subr.msk.mxu0 %vm147_vm0, %v3817_v0  ;;  %3757 = vmatprep.subr.msk.mxu1 %vm147_vm0, %v3817_v0  ;;  %v28_v7 = vld [vmem:[%s5716_s0 + $0x48] sm:$0xff]  ;;  %v38_v8 = vld [vmem:[%s5717_s1 + $0x18] sm:$0xff] }
   0x3   :  { %v19_v4 = vld [vmem:[%s5716_s0] sm:$0xff]  ;;  %79 = vperm.xlu1 %3762, %v37_v1   ;;  %69 = vperm.xlu0 %3761, %v35_v2   ;;  %v36_v9 = vld [vmem:[%s5717_s1 + $0x8] sm:$0xff]  ;;  %v21_v10 = vld [vmem:[%s5716_s0 + $0x10] sm:$0xff] }
   0x4   :  { %v27_v5 = vld [vmem:[%s5716_s0 + $0x40] sm:$0xff]  ;;  %3576 = vmatpush3.xpose.msk.msra.mxu0 %vm147_vm0, %v3817_v0  ;;  %3758 = vmatpush3.xpose.msk.msra.mxu1 %vm147_vm0, %v3817_v0  ;;  %v29_v11 = vld [vmem:[%s5716_s0 + $0x50] sm:$0xff]  ;;  %v22_v12 = vld [vmem:[%s5716_s0 + $0x18] sm:$0xff] }
   0x5   :  { %3577 = vmatprep.mubr.msk.f32.mxu0 %vm147_vm0, %v19_v4  ;;  %3589 = vmatprep.mubr.msk.f32.mxu1 %vm147_vm0, %v27_v5  ;;  %v30_v13 = vld [vmem:[%s5716_s0 + $0x58] sm:$0xff]  ;;  %v40_v14 = vld [vmem:[%s5717_s1 + $0x28] sm:$0xff]  ;;  %v39_v15 = vld [vmem:[%s5717_s1 + $0x20] sm:$0xff] }
   0x6   :  { %3601 = vmatprep.subr.msk.mxu1 %vm147_vm0, %v3817_v0  ;;  %3627 = vmatprep.subr.msk.mxu0 %vm147_vm0, %v3817_v0  ;;  %v23_v16 = vld [vmem:[%s5716_s0 + $0x20] sm:$0xff]  ;;  %v24_v18 = vld [vmem:[%s5716_s0 + $0x28] sm:$0xff]  ;;  %v42_v20 = vld [vmem:[%s5717_s1 + $0x38] sm:$0xff] }
   0x7   :  { %3578 = vmatmul.mubr.msk.f32.vlgmr.msra.gmra.mrb[0].mxu0 %vm147_vm0, %v20_v6  ;;  %3590 = vmatmul.mubr.msk.f32.vlgmr.msra.gmra.mrb[0].mxu1 %vm147_vm0, %v28_v7  ;;  %v31_v17 = vld [vmem:[%s5716_s0 + $0x60] sm:$0xff]  ;;  %v32_v19 = vld [vmem:[%s5716_s0 + $0x68] sm:$0xff]  ;;  %v41_v21 = vld [vmem:[%s5717_s1 + $0x30] sm:$0xff] }
   0x8   :  { %84 = vperm.xlu1 %3762, %v38_v8   ;;  %74 = vperm.xlu0 %3761, %v36_v9   ;;  %v25_v22 = vld [vmem:[%s5716_s0 + $0x30] sm:$0xff]  ;;  %v26_v24 = vld [vmem:[%s5716_s0 + $0x38] sm:$0xff]  ;;  %v44_v26 = vld [vmem:[%s5717_s1 + $0x48] sm:$0xff] }
   0x9   :  { %3580 = vmatprep.mubr.msk.f32.mxu0 %vm147_vm0, %v21_v10  ;;  %3592 = vmatprep.mubr.msk.f32.mxu1 %vm147_vm0, %v29_v11  ;;  %v33_v23 = vld [vmem:[%s5716_s0 + $0x70] sm:$0xff]  ;;  %v34_v25 = vld [vmem:[%s5716_s0 + $0x78] sm:$0xff]  ;;  %v43_v27 = vld [vmem:[%s5717_s1 + $0x40] sm:$0xff] }
   0xa   :  { %3602 = vmatpush3.xpose.msk.msra.mxu1 %vm147_vm0, %v3817_v0  ;;  %3628 = vmatpush3.xpose.msk.msra.mxu0 %vm147_vm0, %v3817_v0  ;;  %v495_v28 = vld [vmem:[%s5716_s0 + $0x80] sm:$0xff]  ;;  %v496_v30 = vld [vmem:[%s5716_s0 + $0x88] sm:$0xff]  ;;  %v46_v32 = vld [vmem:[%s5717_s1 + $0x58] sm:$0xff] }
   0xb   :  { %3581 = vmatmul.mubr.msk.f32.gmra.mrb[2].mxu0 %vm147_vm0, %v22_v12  ;;  %3593 = vmatmul.mubr.msk.f32.gmra.mrb[2].mxu1 %vm147_vm0, %v30_v13  ;;  %v966_v29 = vld [vmem:[%s5716_s0 + $0x100] sm:$0xff]  ;;  %v967_v31 = vld [vmem:[%s5716_s0 + $0x108] sm:$0xff]  ;;  %v45_v33 = vld [vmem:[%s5717_s1 + $0x50] sm:$0xff] }
   0xc   :  { %94 = vperm.xlu1 %3762, %v40_v14   ;;  %89 = vperm.xlu0 %3761, %v39_v15   ;;  %v497_v34 = vld [vmem:[%s5716_s0 + $0x90] sm:$0xff]  ;;  %v498_v36 = vld [vmem:[%s5716_s0 + $0x98] sm:$0xff]  ;;  %v48_v38 = vld [vmem:[%s5717_s1 + $0x68] sm:$0xff] }
   0xd   :  { %3583 = vmatprep.mubr.msk.f32.mxu0 %vm147_vm0, %v23_v16  ;;  %3595 = vmatprep.mubr.msk.f32.mxu1 %vm147_vm0, %v31_v17  ;;  %v968_v35 = vld [vmem:[%s5716_s0 + $0x110] sm:$0xff]  ;;  %v969_v37 = vld [vmem:[%s5716_s0 + $0x118] sm:$0xff]  ;;  %v47_v39 = vld [vmem:[%s5717_s1 + $0x60] sm:$0xff] }
   0xe   :  { %3653 = vmatprep.subr.msk.mxu1 %vm147_vm0, %v3817_v0  ;;  %3679 = vmatprep.subr.msk.mxu0 %vm147_vm0, %v3817_v0  ;;  %v499_v40 = vld [vmem:[%s5716_s0 + $0xa0] sm:$0xff]  ;;  %v500_v42 = vld [vmem:[%s5716_s0 + $0xa8] sm:$0xff]  ;;  %v50_v44 = vld [vmem:[%s5717_s1 + $0x78] sm:$0xff] }
   0xf   :  { %3584 = vmatmul.mubr.msk.f32.gmra.mrb[4].mxu0 %vm147_vm0, %v24_v18  ;;  %3596 = vmatmul.mubr.msk.f32.gmra.mrb[4].mxu1 %vm147_vm0, %v32_v19  ;;  %v970_v41 = vld [vmem:[%s5716_s0 + $0x120] sm:$0xff]  ;;  %v971_v43 = vld [vmem:[%s5716_s0 + $0x128] sm:$0xff]  ;;  %v49_v45 = vld [vmem:[%s5717_s1 + $0x70] sm:$0xff] }
  0x10   :  { %104 = vperm.xlu1 %3762, %v42_v20   ;;  %99 = vperm.xlu0 %3761, %v41_v21   ;;  %v501_v46 = vld [vmem:[%s5716_s0 + $0xb0] sm:$0xff]  ;;  %v502_v48 = vld [vmem:[%s5716_s0 + $0xb8] sm:$0xff]  ;;  %v52_v50 = vld [vmem:[%s5718_s2 + $0x8] sm:$0xff] }
  0x11   :  { %3586 = vmatprep.mubr.msk.f32.mxu0 %vm147_vm0, %v25_v22  ;;  %3598 = vmatprep.mubr.msk.f32.mxu1 %vm147_vm0, %v33_v23  ;;  %v972_v47 = vld [vmem:[%s5716_s0 + $0x130] sm:$0xff]  ;;  %v973_v49 = vld [vmem:[%s5716_s0 + $0x138] sm:$0xff]  ;;  %v51_v51 = vld [vmem:[%s5718_s2] sm:$0xff] }
  0x12   :  { %v503_v52 = vld [vmem:[%s5716_s0 + $0xc0] sm:$0xff]  ;;  %v504_v54 = vld [vmem:[%s5716_s0 + $0xc8] sm:$0xff]  ;;  %v54_v56 = vld [vmem:[%s5718_s2 + $0x18] sm:$0xff] }
  0x13   :  { %3587 = vmatmul.mubr.msk.f32.gmra.mrb[6].mxu0 %vm147_vm0, %v26_v24  ;;  %3599 = vmatmul.mubr.msk.f32.gmra.mrb[6].mxu1 %vm147_vm0, %v34_v25  ;;  %v974_v53 = vld [vmem:[%s5716_s0 + $0x140] sm:$0xff]  ;;  %v975_v55 = vld [vmem:[%s5716_s0 + $0x148] sm:$0xff]  ;;  %v53_v57 = vld [vmem:[%s5718_s2 + $0x10] sm:$0xff] }
  0x14   :  { %114 = vperm.xlu1 %3762, %v44_v26   ;;  %109 = vperm.xlu0 %3761, %v43_v27   ;;  %v505_v58 = vld [vmem:[%s5716_s0 + $0xd0] sm:$0xff]  ;;  %v506_v60 = vld [vmem:[%s5716_s0 + $0xd8] sm:$0xff]  ;;  %v56_v62 = vld [vmem:[%s5718_s2 + $0x28] sm:$0xff] }
  0x15   :  { %3603 = vmatprep.mubr.msk.f32.mxu1 %vm147_vm0, %v495_v28  ;;  %3629 = vmatprep.mubr.msk.f32.mxu0 %vm147_vm0, %v966_v29  ;;  %v976_v59 = vld [vmem:[%s5716_s0 + $0x150] sm:$0xff]  ;;  %v977_v61 = vld [vmem:[%s5716_s0 + $0x158] sm:$0xff]  ;;  %v55_v63 = vld [vmem:[%s5718_s2 + $0x20] sm:$0xff] }
  0x16   :  { %v507_v1 = vld [vmem:[%s5716_s0 + $0xe0] sm:$0xff]  ;;  %v508_v3 = vld [vmem:[%s5716_s0 + $0xe8] sm:$0xff]  ;;  %v58_v5 = vld [vmem:[%s5718_s2 + $0x38] sm:$0xff] }
  0x17   :  { %3604 = vmatmul.mubr.msk.f32.vlgmr.msra.gmra.mrb[8].mxu1 %vm147_vm0, %v496_v30  ;;  %3630 = vmatmul.mubr.msk.f32.vlgmr.msra.gmra.mrb[8].mxu0 %vm147_vm0, %v967_v31  ;;  %v978_v2 = vld [vmem:[%s5716_s0 + $0x160] sm:$0xff]  ;;  %v979_v4 = vld [vmem:[%s5716_s0 + $0x168] sm:$0xff]  ;;  %v57_v6 = vld [vmem:[%s5718_s2 + $0x30] sm:$0xff] }
  0x18   :  { %124 = vperm.xlu1 %3762, %v46_v32   ;;  %119 = vperm.xlu0 %3761, %v45_v33   ;;  %v509_v7 = vld [vmem:[%s5716_s0 + $0xf0] sm:$0xff]  ;;  %v510_v9 = vld [vmem:[%s5716_s0 + $0xf8] sm:$0xff]  ;;  %v60_v11 = vld [vmem:[%s5718_s2 + $0x48] sm:$0xff] }
  0x19   :  { %3606 = vmatprep.mubr.msk.f32.mxu1 %vm147_vm0, %v497_v34  ;;  %3632 = vmatprep.mubr.msk.f32.mxu0 %vm147_vm0, %v968_v35  ;;  %v980_v8 = vld [vmem:[%s5716_s0 + $0x170] sm:$0xff]  ;;  %v981_v10 = vld [vmem:[%s5716_s0 + $0x178] sm:$0xff]  ;;  %v59_v12 = vld [vmem:[%s5718_s2 + $0x40] sm:$0xff] }
  0x1a   :  { %3654 = vmatpush3.xpose.msk.msra.mxu1 %vm147_vm0, %v3817_v0  ;;  %3680 = vmatpush3.xpose.msk.msra.mxu0 %vm147_vm0, %v3817_v0  ;;  %v1437_v13 = vld [vmem:[%s5716_s0 + $0x180] sm:$0xff]  ;;  %v1438_v15 = vld [vmem:[%s5716_s0 + $0x188] sm:$0xff]  ;;  %v62_v17 = vld [vmem:[%s5718_s2 + $0x58] sm:$0xff] }
  0x1b   :  { %3607 = vmatmul.mubr.msk.f32.gmra.mrb[10].mxu1 %vm147_vm0, %v498_v36  ;;  %3633 = vmatmul.mubr.msk.f32.gmra.mrb[10].mxu0 %vm147_vm0, %v969_v37  ;;  %v1908_v14 = vld [vmem:[%s5716_s0 + $0x200] sm:$0xff]  ;;  %v1909_v16 = vld [vmem:[%s5716_s0 + $0x208] sm:$0xff]  ;;  %v61_v18 = vld [vmem:[%s5718_s2 + $0x50] sm:$0xff] }
  0x1c   :  { %134 = vperm.xlu1 %3762, %v48_v38   ;;  %129 = vperm.xlu0 %3761, %v47_v39  }
  0x1d   :  { %3609 = vmatprep.mubr.msk.f32.mxu1 %vm147_vm0, %v499_v40  ;;  %3635 = vmatprep.mubr.msk.f32.mxu0 %vm147_vm0, %v970_v41 }
  0x1e   :  { %3705 = vmatprep.subr.msk.mxu1 %vm147_vm0, %v3817_v0  ;;  %3731 = vmatprep.subr.msk.mxu0 %vm147_vm0, %v3817_v0 }
  0x1f   :  { %3610 = vmatmul.mubr.msk.f32.gmra.mrb[12].mxu1 %vm147_vm0, %v500_v42  ;;  %3636 = vmatmul.mubr.msk.f32.gmra.mrb[12].mxu0 %vm147_vm0, %v971_v43 }
  0x20   :  { %144 = vperm.xlu1 %3762, %v50_v44   ;;  %139 = vperm.xlu0 %3761, %v49_v45  }
  0x21   :  { %3612 = vmatprep.mubr.msk.f32.mxu1 %vm147_vm0, %v501_v46  ;;  %3638 = vmatprep.mubr.msk.f32.mxu0 %vm147_vm0, %v972_v47 }
  0x23   :  { %3613 = vmatmul.mubr.msk.f32.gmra.mrb[14].mxu1 %vm147_vm0, %v502_v48  ;;  %3639 = vmatmul.mubr.msk.f32.gmra.mrb[14].mxu0 %vm147_vm0, %v973_v49 }
  0x24   :  { %367 = vperm.xlu1 %3762, %v52_v50   ;;  %362 = vperm.xlu0 %3761, %v51_v51  }
  0x25   :  { %3615 = vmatprep.mubr.msk.f32.mxu1 %vm147_vm0, %v503_v52  ;;  %3641 = vmatprep.mubr.msk.f32.mxu0 %vm147_vm0, %v974_v53 }
  0x27   :  { %3616 = vmatmul.mubr.msk.f32.gmra.mrb[16].mxu1 %vm147_vm0, %v504_v54  ;;  %3642 = vmatmul.mubr.msk.f32.gmra.mrb[16].mxu0 %vm147_vm0, %v975_v55 }
  0x28   :  { %377 = vperm.xlu1 %3762, %v54_v56   ;;  %372 = vperm.xlu0 %3761, %v53_v57  }
  0x29   :  { %3618 = vmatprep.mubr.msk.f32.mxu1 %vm147_vm0, %v505_v58  ;;  %3644 = vmatprep.mubr.msk.f32.mxu0 %vm147_vm0, %v976_v59 }
  0x2b   :  { %3619 = vmatmul.mubr.msk.f32.gmra.mrb[18].mxu1 %vm147_vm0, %v506_v60  ;;  %3645 = vmatmul.mubr.msk.f32.gmra.mrb[18].mxu0 %vm147_vm0, %v977_v61 }
  0x2c   :  { %387 = vperm.xlu1 %3762, %v56_v62   ;;  %382 = vperm.xlu0 %3761, %v55_v63  }
  0x2d   :  { %3621 = vmatprep.mubr.msk.f32.mxu1 %vm147_vm0, %v507_v1  ;;  %3647 = vmatprep.mubr.msk.f32.mxu0 %vm147_vm0, %v978_v2 }
  0x2f   :  { %3622 = vmatmul.mubr.msk.f32.gmra.mrb[20].mxu1 %vm147_vm0, %v508_v3  ;;  %3648 = vmatmul.mubr.msk.f32.gmra.mrb[20].mxu0 %vm147_vm0, %v979_v4 }
  0x30   :  { %397 = vperm.xlu1 %3762, %v58_v5   ;;  %392 = vperm.xlu0 %3761, %v57_v6  }
  0x31   :  { %3624 = vmatprep.mubr.msk.f32.mxu1 %vm147_vm0, %v509_v7  ;;  %3650 = vmatprep.mubr.msk.f32.mxu0 %vm147_vm0, %v980_v8 }
  0x33   :  { %3625 = vmatmul.mubr.msk.f32.gmra.mrb[22].mxu1 %vm147_vm0, %v510_v9  ;;  %3651 = vmatmul.mubr.msk.f32.gmra.mrb[22].mxu0 %vm147_vm0, %v981_v10 }
  0x34   :  { %407 = vperm.xlu1 %3762, %v60_v11   ;;  %402 = vperm.xlu0 %3761, %v59_v12  }
  0x35   :  { %3655 = vmatprep.mubr.msk.f32.mxu1 %vm147_vm0, %v1437_v13  ;;  %3681 = vmatprep.mubr.msk.f32.mxu0 %vm147_vm0, %v1908_v14 }
  0x36   :  { %9 = vsyncpa [#allocation3], 0  ;;  %v1439_v19 = vld [vmem:[%s5716_s0 + $0x190] sm:$0xff]  ;;  %v1440_v21 = vld [vmem:[%s5716_s0 + $0x198] sm:$0xff]  ;;  %vm456_vm1 = vcmask 64512   ;;  %vm3321_vm2 = vcmask 57344  }
  0x37   :  { %v1910_v20 = vld [vmem:[%s5716_s0 + $0x210] sm:$0xff]  ;;  %3656 = vmatmul.mubr.msk.f32.vlgmr.msra.gmra.mrb[24].mxu1 %vm147_vm0, %v1438_v15  ;;  %3682 = vmatmul.mubr.msk.f32.vlgmr.msra.gmra.mrb[24].mxu0 %vm147_vm0, %v1909_v16  ;;  %v1911_v22 = vld [vmem:[%s5716_s0 + $0x218] sm:$0xff]  ;;  %v64_v23 = vld [vmem:[%s5718_s2 + $0x68] sm:$0xff] }
  0x38   :  { %417 = vperm.xlu1 %3762, %v62_v17   ;;  %412 = vperm.xlu0 %3761, %v61_v18   ;;  %v63_v24 = vld [vmem:[%s5718_s2 + $0x60] sm:$0xff]  ;;  %v1442_v27 = vld [vmem:[%s5716_s0 + $0x1a8] sm:$0xff]  ;;  %v66_v29 = vld [vmem:[%s5718_s2 + $0x78] sm:$0xff] }
  0x39   :  { %3658 = vmatprep.mubr.msk.f32.mxu1 %vm147_vm0, %v1439_v19  ;;  %3684 = vmatprep.mubr.msk.f32.mxu0 %vm147_vm0, %v1910_v20  ;;  %v1441_v25 = vld [vmem:[%s5716_s0 + $0x1a0] sm:$0xff]  ;;  %v1913_v28 = vld [vmem:[%s5716_s0 + $0x228] sm:$0xff]  ;;  %v1443_v30 = vld [vmem:[%s5716_s0 + $0x1b0] sm:$0xff] }
  0x3a   :  { %v1912_v26 = vld [vmem:[%s5716_s0 + $0x220] sm:$0xff]  ;;  %3706 = vmatpush3.xpose.msk.msra.mxu1 %vm147_vm0, %v3817_v0  ;;  %3732 = vmatpush3.xpose.msk.msra.mxu0 %vm147_vm0, %v3817_v0  ;;  %v65_v0 = vld [vmem:[%s5718_s2 + $0x70] sm:$0xff]  ;;  %v1444_v32 = vld [vmem:[%s5716_s0 + $0x1b8] sm:$0xff] }
  0x3b   :  { %3659 = vmatmul.mubr.msk.f32.gmra.mrb[26].mxu1 %vm147_vm0, %v1440_v21  ;;  %3685 = vmatmul.mubr.msk.f32.gmra.mrb[26].mxu0 %vm147_vm0, %v1911_v22  ;;  %v1914_v31 = vld [vmem:[%s5716_s0 + $0x230] sm:$0xff]  ;;  %v1915_v33 = vld [vmem:[%s5716_s0 + $0x238] sm:$0xff]  ;;  %v512_v34 = vld [vmem:[%s5717_s1 + $0x88] sm:$0xff] }
  0x3c   :  { %427 = vperm.xlu1 %3762, %v64_v23   ;;  %422 = vperm.xlu0 %3761, %v63_v24   ;;  %v511_v35 = vld [vmem:[%s5717_s1 + $0x80] sm:$0xff]  ;;  %v1446_v38 = vld [vmem:[%s5716_s0 + $0x1c8] sm:$0xff]  ;;  %v514_v40 = vld [vmem:[%s5717_s1 + $0x98] sm:$0xff] }
  0x3d   :  { %3661 = vmatprep.mubr.msk.f32.mxu1 %vm147_vm0, %v1441_v25  ;;  %3687 = vmatprep.mubr.msk.f32.mxu0 %vm147_vm0, %v1912_v26  ;;  %v1445_v36 = vld [vmem:[%s5716_s0 + $0x1c0] sm:$0xff]  ;;  %v1917_v39 = vld [vmem:[%s5716_s0 + $0x248] sm:$0xff]  ;;  %v513_v41 = vld [vmem:[%s5717_s1 + $0x90] sm:$0xff] }
  0x3e   :  { %v1916_v37 = vld [vmem:[%s5716_s0 + $0x240] sm:$0xff]  ;;  %v1447_v42 = vld [vmem:[%s5716_s0 + $0x1d0] sm:$0xff]  ;;  %v1448_v44 = vld [vmem:[%s5716_s0 + $0x1d8] sm:$0xff] }
  0x3f   :  { %3662 = vmatmul.mubr.msk.f32.gmra.mrb[28].mxu1 %vm147_vm0, %v1442_v27  ;;  %3688 = vmatmul.mubr.msk.f32.gmra.mrb[28].mxu0 %vm147_vm0, %v1913_v28  ;;  %v1918_v43 = vld [vmem:[%s5716_s0 + $0x250] sm:$0xff]  ;;  %v1919_v45 = vld [vmem:[%s5716_s0 + $0x258] sm:$0xff]  ;;  %v516_v46 = vld [vmem:[%s5717_s1 + $0xa8] sm:$0xff] }
  0x40   :  { %437 = vperm.xlu1 %3762, %v66_v29   ;;  %432 = vperm.xlu0 %3761, %v65_v0   ;;  %v515_v47 = vld [vmem:[%s5717_s1 + $0xa0] sm:$0xff]  ;;  %v1450_v50 = vld [vmem:[%s5716_s0 + $0x1e8] sm:$0xff]  ;;  %v518_v52 = vld [vmem:[%s5717_s1 + $0xb8] sm:$0xff] }
  0x41   :  { %3664 = vmatprep.mubr.msk.f32.mxu1 %vm147_vm0, %v1443_v30  ;;  %3690 = vmatprep.mubr.msk.f32.mxu0 %vm147_vm0, %v1914_v31  ;;  %v1449_v48 = vld [vmem:[%s5716_s0 + $0x1e0] sm:$0xff]  ;;  %v1921_v51 = vld [vmem:[%s5716_s0 + $0x268] sm:$0xff]  ;;  %v517_v53 = vld [vmem:[%s5717_s1 + $0xb0] sm:$0xff] }
  0x42   :  { %v1920_v49 = vld [vmem:[%s5716_s0 + $0x260] sm:$0xff]  ;;  %v1451_v54 = vld [vmem:[%s5716_s0 + $0x1f0] sm:$0xff]  ;;  %v1452_v56 = vld [vmem:[%s5716_s0 + $0x1f8] sm:$0xff] }
  0x43   :  { %3665 = vmatmul.mubr.msk.f32.gmra.mrb[30].mxu1 %vm147_vm0, %v1444_v32  ;;  %3691 = vmatmul.mubr.msk.f32.gmra.mrb[30].mxu0 %vm147_vm0, %v1915_v33  ;;  %v1922_v55 = vld [vmem:[%s5716_s0 + $0x270] sm:$0xff]  ;;  %v1923_v57 = vld [vmem:[%s5716_s0 + $0x278] sm:$0xff]  ;;  %v520_v58 = vld [vmem:[%s5717_s1 + $0xc8] sm:$0xff] }
  0x44   :  { %550 = vperm.xlu1 %3762, %v512_v34   ;;  %545 = vperm.xlu0 %3761, %v511_v35   ;;  %v519_v59 = vld [vmem:[%s5717_s1 + $0xc0] sm:$0xff]  ;;  %v522_v60 = vld [vmem:[%s5717_s1 + $0xd8] sm:$0xff]  ;;  %v521_v61 = vld [vmem:[%s5717_s1 + $0xd0] sm:$0xff] }
  0x45   :  { %3667 = vmatprep.mubr.msk.f32.mxu1 %vm147_vm0, %v1445_v36  ;;  %3693 = vmatprep.mubr.msk.f32.mxu0 %vm147_vm0, %v1916_v37  ;;  %v524_v62 = vld [vmem:[%s5717_s1 + $0xe8] sm:$0xff]  ;;  %v523_v63 = vld [vmem:[%s5717_s1 + $0xe0] sm:$0xff]  ;;  %v526_v1 = vld [vmem:[%s5717_s1 + $0xf8] sm:$0xff] }
  0x46   :  { %v525_v2 = vld [vmem:[%s5717_s1 + $0xf0] sm:$0xff]  ;;  %v528_v3 = vld [vmem:[%s5718_s2 + $0x88] sm:$0xff]  ;;  %v527_v4 = vld [vmem:[%s5718_s2 + $0x80] sm:$0xff] }
  0x47   :  { %3668 = vmatmul.mubr.msk.f32.gmra.mrb[32].mxu1 %vm147_vm0, %v1446_v38  ;;  %3694 = vmatmul.mubr.msk.f32.gmra.mrb[32].mxu0 %vm147_vm0, %v1917_v39  ;;  %v530_v5 = vld [vmem:[%s5718_s2 + $0x98] sm:$0xff]  ;;  %v529_v6 = vld [vmem:[%s5718_s2 + $0x90] sm:$0xff]  ;;  %v532_v7 = vld [vmem:[%s5718_s2 + $0xa8] sm:$0xff] }
  0x48   :  { %560 = vperm.xlu1 %3762, %v514_v40   ;;  %555 = vperm.xlu0 %3761, %v513_v41   ;;  %v531_v8 = vld [vmem:[%s5718_s2 + $0xa0] sm:$0xff]  ;;  %v534_v9 = vld [vmem:[%s5718_s2 + $0xb8] sm:$0xff]  ;;  %v533_v10 = vld [vmem:[%s5718_s2 + $0xb0] sm:$0xff] }
  0x49   :  { %3670 = vmatprep.mubr.msk.f32.mxu1 %vm147_vm0, %v1447_v42  ;;  %3696 = vmatprep.mubr.msk.f32.mxu0 %vm147_vm0, %v1918_v43  ;;  %v2379_v11 = vld [vmem:[%s5716_s0 + $0x280] sm:$0xff]  ;;  %v536_v12 = vld [vmem:[%s5718_s2 + $0xc8] sm:$0xff]  ;;  %v2381_v15 = vld [vmem:[%s5716_s0 + $0x290] sm:$0xff] }
  0x4a   :  { %v535_v13 = vld [vmem:[%s5718_s2 + $0xc0] sm:$0xff]  ;;  %v2380_v14 = vld [vmem:[%s5716_s0 + $0x288] sm:$0xff]  ;;  %v538_v16 = vld [vmem:[%s5718_s2 + $0xd8] sm:$0xff] }
  0x4b   :  { %3671 = vmatmul.mubr.msk.f32.gmra.mrb[34].mxu1 %vm147_vm0, %v1448_v44  ;;  %3697 = vmatmul.mubr.msk.f32.gmra.mrb[34].mxu0 %vm147_vm0, %v1919_v45  ;;  %v537_v17 = vld [vmem:[%s5718_s2 + $0xd0] sm:$0xff]  ;;  %v2382_v18 = vld [vmem:[%s5716_s0 + $0x298] sm:$0xff]  ;;  %v2383_v19 = vld [vmem:[%s5716_s0 + $0x2a0] sm:$0xff] }
  0x4c   :  { %570 = vperm.xlu1 %3762, %v516_v46   ;;  %565 = vperm.xlu0 %3761, %v515_v47   ;;  %v540_v20 = vld [vmem:[%s5718_s2 + $0xe8] sm:$0xff]  ;;  %v539_v21 = vld [vmem:[%s5718_s2 + $0xe0] sm:$0xff]  ;;  %v2385_v23 = vld [vmem:[%s5716_s0 + $0x2b0] sm:$0xff] }
  0x4d   :  { %3673 = vmatprep.mubr.msk.f32.mxu1 %vm147_vm0, %v1449_v48  ;;  %3699 = vmatprep.mubr.msk.f32.mxu0 %vm147_vm0, %v1920_v49  ;;  %v2384_v22 = vld [vmem:[%s5716_s0 + $0x2a8] sm:$0xff]  ;;  %v542_v24 = vld [vmem:[%s5718_s2 + $0xf8] sm:$0xff]  ;;  %v541_v25 = vld [vmem:[%s5718_s2 + $0xf0] sm:$0xff] }
  0x4e   :  { %v2386_v26 = vld [vmem:[%s5716_s0 + $0x2b8] sm:$0xff]  ;;  %v2387_v27 = vld [vmem:[%s5716_s0 + $0x2c0] sm:$0xff]  ;;  %v983_v28 = vld [vmem:[%s5717_s1 + $0x108] sm:$0xff] }
  0x4f   :  { %3674 = vmatmul.mubr.msk.f32.gmra.mrb[36].mxu1 %vm147_vm0, %v1450_v50  ;;  %3700 = vmatmul.mubr.msk.f32.gmra.mrb[36].mxu0 %vm147_vm0, %v1921_v51  ;;  %v982_v29 = vld [vmem:[%s5717_s1 + $0x100] sm:$0xff]  ;;  %v2388_v0 = vld [vmem:[%s5716_s0 + $0x2c8] sm:$0xff]  ;;  %v2389_v32 = vld [vmem:[%s5716_s0 + $0x2d0] sm:$0xff] }
  0x50   :  { %580 = vperm.xlu1 %3762, %v518_v52   ;;  %575 = vperm.xlu0 %3761, %v517_v53   ;;  %v985_v33 = vld [vmem:[%s5717_s1 + $0x118] sm:$0xff]  ;;  %v984_v34 = vld [vmem:[%s5717_s1 + $0x110] sm:$0xff]  ;;  %v2391_v38 = vld [vmem:[%s5716_s0 + $0x2e0] sm:$0xff] }
  0x51   :  { %3676 = vmatprep.mubr.msk.f32.mxu1 %vm147_vm0, %v1451_v54  ;;  %3702 = vmatprep.mubr.msk.f32.mxu0 %vm147_vm0, %v1922_v55  ;;  %v2390_v35 = vld [vmem:[%s5716_s0 + $0x2d8] sm:$0xff]  ;;  %v987_v39 = vld [vmem:[%s5717_s1 + $0x128] sm:$0xff]  ;;  %v986_v40 = vld [vmem:[%s5717_s1 + $0x120] sm:$0xff] }
  0x52   :  { %v2392_v41 = vld [vmem:[%s5716_s0 + $0x2e8] sm:$0xff]  ;;  %v2393_v44 = vld [vmem:[%s5716_s0 + $0x2f0] sm:$0xff]  ;;  %v989_v45 = vld [vmem:[%s5717_s1 + $0x138] sm:$0xff] }
  0x53   :  { %3677 = vmatmul.mubr.msk.f32.gmra.mrb[38].mxu1 %vm147_vm0, %v1452_v56  ;;  %3703 = vmatmul.mubr.msk.f32.gmra.mrb[38].mxu0 %vm147_vm0, %v1923_v57  ;;  %v988_v46 = vld [vmem:[%s5717_s1 + $0x130] sm:$0xff]  ;;  %v2394_v47 = vld [vmem:[%s5716_s0 + $0x2f8] sm:$0xff]  ;;  %v991_v50 = vld [vmem:[%s5717_s1 + $0x148] sm:$0xff] }
  0x54   :  { %590 = vperm.xlu1 %3762, %v520_v58   ;;  %585 = vperm.xlu0 %3761, %v519_v59   ;;  %v990_v51 = vld [vmem:[%s5717_s1 + $0x140] sm:$0xff]  ;;  %v993_v54 = vld [vmem:[%s5717_s1 + $0x158] sm:$0xff]  ;;  %v992_v55 = vld [vmem:[%s5717_s1 + $0x150] sm:$0xff] }
  0x55   :  { %3707 = vmatprep.mubr.msk.f32.mxu1 %vm147_vm0, %v2379_v11  ;;  %v995_v58 = vld [vmem:[%s5717_s1 + $0x168] sm:$0xff]  ;;  %v994_v59 = vld [vmem:[%s5717_s1 + $0x160] sm:$0xff] }
  0x56   :  { %v1003_v11 = vld [vmem:[%s5718_s2 + $0x128] sm:$0xff] }
  0x57   :  { %3708 = vmatmul.mubr.msk.f32.vlgmr.msra.gmra.mrb[40].mxu1 %vm147_vm0, %v2380_v14 }
  0x58   :  { %600 = vperm.xlu1 %3762, %v522_v60   ;;  %595 = vperm.xlu0 %3761, %v521_v61  }
  0x59   :  { %3710 = vmatprep.mubr.msk.f32.mxu1 %vm147_vm0, %v2381_v15  ;;  %v1005_v15 = vld [vmem:[%s5718_s2 + $0x138] sm:$0xff] }
  0x5b   :  { %3711 = vmatmul.mubr.msk.f32.gmra.mrb[42].mxu1 %vm147_vm0, %v2382_v18 }
  0x5c   :  { %610 = vperm.xlu1 %3762, %v524_v62   ;;  %605 = vperm.xlu0 %3761, %v523_v63   ;;  %v997_v62 = vld [vmem:[%s5717_s1 + $0x178] sm:$0xff]  ;;  %v996_v63 = vld [vmem:[%s5717_s1 + $0x170] sm:$0xff] }
  0x5d   :  { %3713 = vmatprep.mubr.msk.f32.mxu1 %vm147_vm0, %v2383_v19  ;;  %v2850_v19 = vld [vmem:[%s5716_s0 + $0x300] sm:$0xff] }
  0x5e   :  { %3733 = vmatprep.mubr.msk.f32.mxu0 %vm147_vm0, %v2850_v19 }
  0x5f   :  { %3714 = vmatmul.mubr.msk.f32.gmra.mrb[44].mxu1 %vm147_vm0, %v2384_v22  ;;  %v2851_v22 = vld [vmem:[%s5716_s0 + $0x308] sm:$0xff] }
  0x60   :  { %620 = vperm.xlu1 %3762, %v526_v1   ;;  %615 = vperm.xlu0 %3761, %v525_v2  }
  0x61   :  { %3716 = vmatprep.mubr.msk.f32.mxu1 %vm147_vm0, %v2385_v23  ;;  %3734 = vmatmul.mubr.msk.f32.vlgmr.msra.gmra.mrb[40].mxu0 %vm147_vm0, %v2851_v22  ;;  %v1461_v22 = vld [vmem:[%s5717_s1 + $0x1c0] sm:$0xff] }
  0x63   :  { %3717 = vmatmul.mubr.msk.f32.gmra.mrb[46].mxu1 %vm147_vm0, %v2386_v26  ;;  %v1009_v26 = vld [vmem:[%s5718_s2 + $0x158] sm:$0xff] }
  0x64   :  { %839 = vperm.xlu1 %3762, %v528_v3   ;;  %834 = vperm.xlu0 %3761, %v527_v4   ;;  %v999_v3 = vld [vmem:[%s5718_s2 + $0x108] sm:$0xff]  ;;  %v998_v4 = vld [vmem:[%s5718_s2 + $0x100] sm:$0xff] }
  0x65   :  { %3719 = vmatprep.mubr.msk.f32.mxu1 %vm147_vm0, %v2387_v27  ;;  %v1008_v27 = vld [vmem:[%s5718_s2 + $0x150] sm:$0xff] }
  0x67   :  { %3720 = vmatmul.mubr.msk.f32.gmra.mrb[48].mxu1 %vm147_vm0, %v2388_v0 }
  0x68   :  { %849 = vperm.xlu1 %3762, %v530_v5   ;;  %844 = vperm.xlu0 %3761, %v529_v6  }
  0x69   :  { %3722 = vmatprep.mubr.msk.f32.mxu1 %vm147_vm0, %v2389_v32  ;;  %v1011_v32 = vld [vmem:[%s5718_s2 + $0x168] sm:$0xff] }
  0x6b   :  { %3723 = vmatmul.mubr.msk.f32.gmra.mrb[50].mxu1 %vm147_vm0, %v2390_v35 }
  0x6c   :  { %859 = vperm.xlu1 %3762, %v532_v7   ;;  %854 = vperm.xlu0 %3761, %v531_v8   ;;  %v1001_v7 = vld [vmem:[%s5718_s2 + $0x118] sm:$0xff]  ;;  %v1000_v8 = vld [vmem:[%s5718_s2 + $0x110] sm:$0xff] }
  0x6d   :  { %3725 = vmatprep.mubr.msk.f32.mxu1 %vm147_vm0, %v2391_v38  ;;  %v2854_v38 = vld [vmem:[%s5716_s0 + $0x320] sm:$0xff] }
  0x6f   :  { %3726 = vmatmul.mubr.msk.f32.gmra.mrb[52].mxu1 %vm147_vm0, %v2392_v41  ;;  %v2855_v41 = vld [vmem:[%s5716_s0 + $0x328] sm:$0xff] }
  0x70   :  { %869 = vperm.xlu1 %3762, %v534_v9   ;;  %864 = vperm.xlu0 %3761, %v533_v10  }
  0x71   :  { %3728 = vmatprep.mubr.msk.f32.mxu1 %vm147_vm0, %v2393_v44 }
  0x73   :  { %3729 = vmatmul.mubr.msk.f32.gmra.mrb[54].mxu1 %vm147_vm0, %v2394_v47  ;;  %v1453_v47 = vld [vmem:[%s5717_s1 + $0x180] sm:$0xff] }
  0x74   :  { %879 = vperm.xlu1 %3762, %v536_v12   ;;  %874 = vperm.xlu0 %3761, %v535_v13   ;;  %v1002_v12 = vld [vmem:[%s5718_s2 + $0x120] sm:$0xff] }
  0x78   :  { %889 = vperm.xlu1 %3762, %v538_v16   ;;  %884 = vperm.xlu0 %3761, %v537_v17   ;;  %v1004_v16 = vld [vmem:[%s5718_s2 + $0x130] sm:$0xff] }
  0x7c   :  { %899 = vperm.xlu1 %3762, %v540_v20   ;;  %894 = vperm.xlu0 %3761, %v539_v21   ;;  %v1007_v20 = vld [vmem:[%s5718_s2 + $0x148] sm:$0xff]  ;;  %v1006_v21 = vld [vmem:[%s5718_s2 + $0x140] sm:$0xff] }
  0x80   :  { %909 = vperm.xlu1 %3762, %v542_v24   ;;  %904 = vperm.xlu0 %3761, %v541_v25   ;;  %v2852_v25 = vld [vmem:[%s5716_s0 + $0x310] sm:$0xff] }
  0x81   :  { %3736 = vmatprep.mubr.msk.f32.mxu0 %vm147_vm0, %v2852_v25  ;;  %v2860_v25 = vld [vmem:[%s5716_s0 + $0x350] sm:$0xff] }
  0x82   :  { %v4408_v30 = vpop.permute.xlu1 %79  ;;  %v4410_v31 = vpop.permute.xlu0 %69 }
  0x84   :  { %1021 = vperm.xlu1 %3762, %v983_v28   ;;  %1016 = vperm.xlu0 %3761, %v982_v29   ;;  %v2853_v28 = vld [vmem:[%s5716_s0 + $0x318] sm:$0xff] }
  0x85   :  { %3737 = vmatmul.mubr.msk.f32.gmra.mrb[42].mxu0 %vm147_vm0, %v2853_v28  ;;  %v1464_v28 = vld [vmem:[%s5717_s1 + $0x1d8] sm:$0xff] }
  0x86   :  { %3739 = vmatprep.mubr.msk.f32.mxu0 %vm147_vm0, %v2854_v38 }
  0x87   :  { %v4427_v36 = vpop.permute.xlu1 %84  ;;  %v4429_v37 = vpop.permute.xlu0 %74 }
  0x88   :  { %1031 = vperm.xlu1 %3762, %v985_v33   ;;  %1026 = vperm.xlu0 %3761, %v984_v34   ;;  %v1010_v33 = vld [vmem:[%s5718_s2 + $0x160] sm:$0xff] }
  0x89   :  { %3740 = vmatmul.mubr.msk.f32.gmra.mrb[44].mxu0 %vm147_vm0, %v2855_v41  ;;  %v1465_v41 = vld [vmem:[%s5717_s1 + $0x1e0] sm:$0xff] }
  0x8b   :  { %v4445_v42 = vpop.permute.xlu1 %94  ;;  %v4447_v43 = vpop.permute.xlu0 %89 }
  0x8c   :  { %1041 = vperm.xlu1 %3762, %v987_v39   ;;  %1036 = vperm.xlu0 %3761, %v986_v40   ;;  %v1013_v39 = vld [vmem:[%s5718_s2 + $0x178] sm:$0xff]  ;;  %v1012_v40 = vld [vmem:[%s5718_s2 + $0x170] sm:$0xff] }
  0x8f   :  { %v4463_v48 = vpop.permute.xlu1 %104  ;;  %v4465_v49 = vpop.permute.xlu0 %99 }
  0x90   :  { %1051 = vperm.xlu1 %3762, %v989_v45   ;;  %1046 = vperm.xlu0 %3761, %v988_v46   ;;  %v1454_v46 = vld [vmem:[%s5717_s1 + $0x188] sm:$0xff] }
  0x93   :  { %v4473_v52 = vpop.permute.xlu1 %114  ;;  %v4475_v53 = vpop.permute.xlu0 %109 }
  0x94   :  { %1061 = vperm.xlu1 %3762, %v991_v50   ;;  %1056 = vperm.xlu0 %3761, %v990_v51  }
  0x97   :  { %v4483_v56 = vpop.permute.xlu1 %124  ;;  %v4485_v57 = vpop.permute.xlu0 %119 }
  0x98   :  { %1071 = vperm.xlu1 %3762, %v993_v54   ;;  %1066 = vperm.xlu0 %3761, %v992_v55   ;;  %v2856_v54 = vld [vmem:[%s5716_s0 + $0x330] sm:$0xff]  ;;  %v1456_v55 = vld [vmem:[%s5717_s1 + $0x198] sm:$0xff] }
  0x99   :  { %3742 = vmatprep.mubr.msk.f32.mxu0 %vm147_vm0, %v2856_v54  ;;  %v2862_v54 = vld [vmem:[%s5716_s0 + $0x360] sm:$0xff] }
  0x9b   :  { %v4493_v60 = vpop.permute.xlu1 %134  ;;  %v4495_v61 = vpop.permute.xlu0 %129 }
  0x9c   :  { %1081 = vperm.xlu1 %3762, %v995_v58   ;;  %1076 = vperm.xlu0 %3761, %v994_v59   ;;  %v1455_v58 = vld [vmem:[%s5717_s1 + $0x190] sm:$0xff]  ;;  %v2857_v59 = vld [vmem:[%s5716_s0 + $0x338] sm:$0xff] }
  0x9d   :  { %3743 = vmatmul.mubr.msk.f32.gmra.mrb[46].mxu0 %vm147_vm0, %v2857_v59 }
  0x9f   :  { %v4503_v1 = vpop.permute.xlu1 %144  ;;  %v4505_v2 = vpop.permute.xlu0 %139 }
  0xa0   :  { %1091 = vperm.xlu1 %3762, %v997_v62   ;;  %1086 = vperm.xlu0 %3761, %v996_v63  }
  0xa3   :  { %v4513_v5 = vpop.permute.xlu1 %367  ;;  %v4515_v6 = vpop.permute.xlu0 %362 }
  0xa4   :  { %1310 = vperm.xlu1 %3762, %v999_v3   ;;  %1305 = vperm.xlu0 %3761, %v998_v4   ;;  %v1458_v3 = vld [vmem:[%s5717_s1 + $0x1a8] sm:$0xff]  ;;  %v1457_v4 = vld [vmem:[%s5717_s1 + $0x1a0] sm:$0xff] }
  0xa7   :  { %v4523_v9 = vpop.permute.xlu1 %377  ;;  %v4525_v10 = vpop.permute.xlu0 %372 }
  0xa8   :  { %1320 = vperm.xlu1 %3762, %v1001_v7   ;;  %1315 = vperm.xlu0 %3761, %v1000_v8  }
  0xab   :  { %v4533_v13 = vpop.permute.xlu1 %387  ;;  %v4535_v14 = vpop.permute.xlu0 %382 }
  0xac   :  { %1330 = vperm.xlu1 %3762, %v1003_v11   ;;  %1325 = vperm.xlu0 %3761, %v1002_v12   ;;  %v2858_v11 = vld [vmem:[%s5716_s0 + $0x340] sm:$0xff]  ;;  %v1460_v12 = vld [vmem:[%s5717_s1 + $0x1b8] sm:$0xff] }
  0xad   :  { %3745 = vmatprep.mubr.msk.f32.mxu0 %vm147_vm0, %v2858_v11 }
  0xaf   :  { %v4543_v17 = vpop.permute.xlu1 %397  ;;  %v4545_v18 = vpop.permute.xlu0 %392 }
  0xb0   :  { %1340 = vperm.xlu1 %3762, %v1005_v15   ;;  %1335 = vperm.xlu0 %3761, %v1004_v16   ;;  %v1459_v15 = vld [vmem:[%s5717_s1 + $0x1b0] sm:$0xff]  ;;  %v2859_v16 = vld [vmem:[%s5716_s0 + $0x348] sm:$0xff] }
  0xb1   :  { %3746 = vmatmul.mubr.msk.f32.gmra.mrb[48].mxu0 %vm147_vm0, %v2859_v16  ;;  %v2863_v16 = vld [vmem:[%s5716_s0 + $0x368] sm:$0xff] }
  0xb2   :  { %3748 = vmatprep.mubr.msk.f32.mxu0 %vm147_vm0, %v2860_v25 }
  0xb3   :  { %v4561_v23 = vpop.permute.xlu1 %407  ;;  %v4563_v24 = vpop.permute.xlu0 %402 }
  0xb4   :  { %1350 = vperm.xlu1 %3762, %v1007_v20   ;;  %1345 = vperm.xlu0 %3761, %v1006_v21   ;;  %v1462_v21 = vld [vmem:[%s5717_s1 + $0x1c8] sm:$0xff] }
  0xb7   :  { %v4579_v29 = vpop.permute.xlu1 %417  ;;  %v4581_v0 = vpop.permute.xlu0 %412 }
  0xb8   :  { %1360 = vperm.xlu1 %3762, %v1009_v26   ;;  %1355 = vperm.xlu0 %3761, %v1008_v27  }
  0xbb   :  { %v4589_v34 = vpop.permute.xlu1 %427  ;;  %v4591_v35 = vpop.permute.xlu0 %422 }
  0xbc   :  { %1370 = vperm.xlu1 %3762, %v1011_v32   ;;  %1365 = vperm.xlu0 %3761, %v1010_v33   ;;  %v1463_v32 = vld [vmem:[%s5717_s1 + $0x1d0] sm:$0xff]  ;;  %v2861_v33 = vld [vmem:[%s5716_s0 + $0x358] sm:$0xff] }
  0xbd   :  { %3749 = vmatmul.mubr.msk.f32.gmra.mrb[50].mxu0 %vm147_vm0, %v2861_v33 }
  0xbe   :  { %3751 = vmatprep.mubr.msk.f32.mxu0 %vm147_vm0, %v2862_v54 }
  0xbf   :  { %v4607_v44 = vpop.permute.xlu1 %437  ;;  %v4609_v45 = vpop.permute.xlu0 %432 }
  0xc0   :  { %1380 = vperm.xlu1 %3762, %v1013_v39   ;;  %1375 = vperm.xlu0 %3761, %v1012_v40   ;;  %v1466_v40 = vld [vmem:[%s5717_s1 + $0x1e8] sm:$0xff] }
  0xc1   :  { %3752 = vmatmul.mubr.msk.f32.gmra.mrb[52].mxu0 %vm147_vm0, %v2863_v16 }
  0xc3   :  { %v4617_v50 = vpop.permute.xlu1 %550  ;;  %v4619_v51 = vpop.permute.xlu0 %545 }
  0xc4   :  { %1492 = vperm.xlu1 %3762, %v1454_v46   ;;  %1487 = vperm.xlu0 %3761, %v1453_v47  }
  0xc7   :  { %v4635_v62 = vpop.permute.xlu1 %560  ;;  %v4637_v63 = vpop.permute.xlu0 %555 }
  0xc8   :  { %1502 = vperm.xlu1 %3762, %v1456_v55   ;;  %1497 = vperm.xlu0 %3761, %v1455_v58  }
  0xcb   :  { %v4645_v7 = vpop.permute.xlu1 %570  ;;  %v4647_v8 = vpop.permute.xlu0 %565 }
  0xcc   :  { %1512 = vperm.xlu1 %3762, %v1458_v3   ;;  %1507 = vperm.xlu0 %3761, %v1457_v4  }
  0xcf   :  { %v4663_v19 = vpop.permute.xlu1 %580  ;;  %v4665_v20 = vpop.permute.xlu0 %575 }
  0xd0   :  { %1522 = vperm.xlu1 %3762, %v1460_v12   ;;  %1517 = vperm.xlu0 %3761, %v1459_v15   ;;  %v1468_v15 = vld [vmem:[%s5717_s1 + $0x1f8] sm:$0xff] }
  0xd3   :  { %v4676_v26 = vpop.permute.xlu1 %590  ;;  %v4678_v27 = vpop.permute.xlu0 %585 }
  0xd4   :  { %1532 = vperm.xlu1 %3762, %v1462_v21   ;;  %1527 = vperm.xlu0 %3761, %v1461_v22  }
  0xd7   :  { %v4691_v38 = vpop.permute.xlu1 %600  ;;  %v4693_v39 = vpop.permute.xlu0 %595 }
  0xd8   :  { %1542 = vperm.xlu1 %3762, %v1464_v28   ;;  %1537 = vperm.xlu0 %3761, %v1463_v32  }
  0xda   :  { %v3579_v46 = vpop.f32.mrb[0].mxu0  ;;  %v3591_v47 = vpop.f32.mrb[0].mxu1 }
  0xdb   :  { %v271_v55 = vadd.f32 %v3579_v46, %v4429_v37  ;;  %v4705_v58 = vpop.permute.xlu1 %610  ;;  %v4707_v59 = vpop.permute.xlu0 %605  ;;  %v1467_v37 = vld [vmem:[%s5717_s1 + $0x1f0] sm:$0xff]  ;;  %v311_v54 = vadd.f32 %v3591_v47, %v4473_v52 }
  0xdc   :  { %v265_v3 = vpop.f32.mrb[1].mxu0  ;;  %v305_v4 = vpop.f32.mrb[1].mxu1  ;;  %1552 = vperm.xlu1 %3762, %v1466_v40   ;;  %1547 = vperm.xlu0 %3761, %v1465_v41  }
  0xdd   :  { %v345_v11 = vmax.f32 %v271_v55, 0.0  ;;  %v266_v12 = vadd.f32 %v265_v3, %v4410_v31  ;;  %v1469_v3 = vld [vmem:[%s5718_s2 + $0x180] sm:$0xff] }
  0xde   :  { %v3582_v21 = vpop.f32.mrb[2].mxu0  ;;  %v3594_v22 = vpop.f32.mrb[2].mxu1 }
  0xdf   :  { %v441_v25 = vmul.f32 %v4513_v5, %v345_v11  ;;  %v344_v31 = vmax.f32 %v266_v12, 0.0  ;;  %v4722_v28 = vpop.permute.xlu1 %620  ;;  %v4724_v32 = vpop.permute.xlu0 %615  ;;  %v281_v33 = vadd.f32 %v3582_v21, %v4427_v36  ;;  %v1470_v5 = vld [vmem:[%s5718_s2 + $0x188] sm:$0xff]  ;;  %v306_v36 = vadd.f32 %v305_v4, %v4475_v53  ;;  %v2864_v21 = vld [vmem:[%s5716_s0 + $0x370] sm:$0xff] }
  0xe0   :  { %5721 = vst [vmem:[#allocation5_spill] sm:$0xff] %v4724_v32  ;;  %v275_v40 = vpop.f32.mrb[3].mxu0  ;;  %v315_v41 = vpop.f32.mrb[3].mxu1  ;;  %1562 = vperm.xlu1 %3762, %v1468_v15   ;;  %1557 = vperm.xlu0 %3761, %v1467_v37  }
  0xe1   :  { %v458_v46 = vsel %vm456_vm1, %v441_v25, 0.0  ;;  %v440_v55 = vmul.f32 %v4515_v6, %v344_v31  ;;  %v347_v11 = vmax.f32 %v281_v33, 0.0  ;;  %v276_v12 = vadd.f32 %v275_v40, %v4408_v30  ;;  %v1471_v40 = vld [vmem:[%s5718_s2 + $0x190] sm:$0xff]  ;;  %3754 = vmatprep.mubr.msk.f32.mxu0 %vm147_vm0, %v2864_v21 }
  0xe2   :  { %v3585_v15 = vpop.f32.mrb[4].mxu0  ;;  %v3597_v37 = vpop.f32.mrb[4].mxu1  ;;  %v353_v30 = vmax.f32 %v311_v54, 0.0  ;;  %v321_v21 = vadd.f32 %v3594_v22, %v4483_v56  ;;  %v1473_v56 = vld [vmem:[%s5718_s2 + $0x1a0] sm:$0xff] }
  0xe3   :  { %v457_v16 = vsel %vm456_vm1, %v440_v55, 0.0  ;;  %v291_v52 = vadd.f32 %v3585_v15, %v4445_v42  ;;  %v4740_v6 = vpop.permute.xlu1 %839  ;;  %v4742_v47 = vpop.permute.xlu0 %834  ;;  %v346_v31 = vmax.f32 %v276_v12, 0.0  ;;  %v1472_v42 = vld [vmem:[%s5718_s2 + $0x198] sm:$0xff]  ;;  %v352_v55 = vmax.f32 %v306_v36, 0.0 }
  0xe4   :  { %v459_v25 = vadd.f32 %v458_v46, %v457_v16  ;;  %v285_v53 = vpop.f32.mrb[5].mxu0  ;;  %v4747_v4 = vpop.f32.mrb[5].mxu1  ;;  %1781 = vperm.xlu1 %3762, %v1470_v5   ;;  %1776 = vperm.xlu0 %3761, %v1469_v3   ;;  %v2865_v46 = vld [vmem:[%s5716_s0 + $0x378] sm:$0xff]  ;;  %v443_v5 = vmul.f32 %v4523_v9, %v347_v11 }
  0xe5   :  { %v286_v33 = vadd.f32 %v285_v53, %v4447_v43  ;;  %v442_v54 = vmul.f32 %v4525_v10, %v346_v31  ;;  %v349_v43 = vmax.f32 %v291_v52, 0.0  ;;  %3755 = vmatmul.mubr.msk.f32.gmra.mrb[54].mxu0 %vm147_vm0, %v2865_v46  ;;  %v449_v10 = vmul.f32 %v4561_v23, %v353_v30 }
  0xe6   :  { %v3588_v3 = vpop.f32.mrb[6].mxu0  ;;  %v4762_v12 = vpop.f32.mrb[6].mxu1  ;;  %v316_v31 = vadd.f32 %v315_v41, %v4485_v57  ;;  %v462_v22 = vsel %vm456_vm1, %v443_v5, 0.0 }
  0xe7   :  { %v348_v15 = vmax.f32 %v286_v33, 0.0  ;;  %v4765_v16 = vpop.permute.xlu1 %849  ;;  %v4767_v53 = vpop.permute.xlu0 %844  ;;  %v460_v32 = vsel %vm456_vm1, %v442_v54, 0.0  ;;  %v301_v36 = vadd.f32 %v3588_v3, %v4463_v48  ;;  %v1474_v33 = vld [vmem:[%s5718_s2 + $0x1a8] sm:$0xff]  ;;  %v448_v48 = vmul.f32 %v4563_v24, %v352_v55 }
  0xe8   :  { %v295_v9 = vpop.f32.mrb[7].mxu0  ;;  %v4772_v11 = vpop.f32.mrb[7].mxu1  ;;  %1791 = vperm.xlu1 %3762, %v1472_v42   ;;  %1786 = vperm.xlu0 %3761, %v1471_v40   ;;  %v461_v52 = vadd.f32 %v460_v32, %v459_v25  ;;  %v445_v42 = vmul.f32 %v4533_v13, %v349_v43  ;;  %v355_v24 = vmax.f32 %v321_v21, 0.0  ;;  %v4795_v55 = vadd.f32 %v3597_v37, %v4493_v60  ;;  %v1475_v60 = vld [vmem:[%s5718_s2 + $0x1b0] sm:$0xff] }
  0xe9   :  { %v444_v40 = vmul.f32 %v4535_v14, %v348_v15  ;;  %v351_v41 = vmax.f32 %v301_v36, 0.0  ;;  %v296_v25 = vadd.f32 %v295_v9, %v4465_v49  ;;  %v354_v43 = vmax.f32 %v316_v31, 0.0 }
  0xea   :  { %v3605_v23 = vpop.f32.mrb[8].mxu1  ;;  %v4786_v32 = vpop.f32.mrb[8].mxu0  ;;  %v463_v57 = vadd.f32 %v462_v22, %v461_v52  ;;  %v4807_v37 = vsel %vm456_vm1, %v449_v10, 0.0  ;;  %v472_v21 = vsel %vm456_vm1, %v448_v48, 0.0  ;;  %v466_v36 = vsel %vm456_vm1, %v445_v42, 0.0 }
  0xeb   :  { %v743_v30 = vadd.f32 %v3605_v23, %v4617_v50  ;;  %v4790_v46 = vpop.permute.xlu1 %859  ;;  %v4792_v54 = vpop.permute.xlu0 %854  ;;  %v464_v13 = vsel %vm456_vm1, %v444_v40, 0.0  ;;  %v350_v49 = vmax.f32 %v296_v25, 0.0  ;;  %v1476_v50 = vld [vmem:[%s5718_s2 + $0x1b8] sm:$0xff]  ;;  %v451_v48 = vmul.f32 %v4579_v29, %v355_v24  ;;  %v1477_v29 = vld [vmem:[%s5718_s2 + $0x1c0] sm:$0xff] }
  0xec   :  { %v737_v14 = vpop.f32.mrb[9].mxu1  ;;  %1801 = vperm.xlu1 %3762, %v1474_v33   ;;  %1796 = vperm.xlu0 %3761, %v1473_v56   ;;  %v4798_v5 = vpop.f32.mrb[9].mxu0  ;;  %v465_v3 = vadd.f32 %v464_v13, %v463_v57  ;;  %v447_v33 = vmul.f32 %v4543_v17, %v351_v41  ;;  %v326_v42 = vadd.f32 %v4747_v4, %v4495_v61  ;;  %v1478_v61 = vld [vmem:[%s5718_s2 + $0x1c8] sm:$0xff] }
  0xed   :  { %v817_v15 = vmax.f32 %v743_v30, 0.0  ;;  %v738_v9 = vadd.f32 %v737_v14, %v4619_v51  ;;  %v446_v56 = vmul.f32 %v4545_v18, %v350_v49  ;;  %v450_v18 = vmul.f32 %v4581_v0, %v354_v43 }
  0xee   :  { %v3608_v52 = vpop.f32.mrb[10].mxu1  ;;  %v4812_v31 = vpop.f32.mrb[10].mxu0  ;;  %v467_v22 = vadd.f32 %v466_v36, %v465_v3  ;;  %v470_v14 = vsel %vm456_vm1, %v447_v33, 0.0 }
  0xef   :  { %v913_v40 = vmul.f32 %v4740_v6, %v817_v15  ;;  %v4817_v23 = vpop.permute.xlu1 %869  ;;  %v4819_v10 = vpop.permute.xlu0 %864  ;;  %v816_v51 = vmax.f32 %v738_v9, 0.0  ;;  %v753_v57 = vadd.f32 %v3608_v52, %v4635_v62  ;;  %v357_v6 = vmax.f32 %v4795_v55, 0.0 }
  0xf0   :  { %v747_v25 = vpop.f32.mrb[11].mxu1  ;;  %1811 = vperm.xlu1 %3762, %v1476_v50   ;;  %1806 = vperm.xlu0 %3761, %v1475_v60   ;;  %v4825_v17 = vpop.f32.mrb[11].mxu0  ;;  %v468_v41 = vsel %vm456_vm1, %v446_v56, 0.0  ;;  %v356_v50 = vmax.f32 %v326_v42, 0.0  ;;  %v1480_v56 = vld [vmem:[%s5718_s2 + $0x1d8] sm:$0xff]  ;;  %v341_v42 = vadd.f32 %v4762_v12, %v4503_v1 }
  0xf1   :  { %v748_v30 = vadd.f32 %v747_v25, %v4637_v63  ;;  %v469_v62 = vadd.f32 %v468_v41, %v467_v22  ;;  %v929_v4 = vsel %vm456_vm1, %v913_v40, 0.0  ;;  %v912_v24 = vmul.f32 %v4742_v47, %v816_v51  ;;  %v1479_v22 = vld [vmem:[%s5718_s2 + $0x1d0] sm:$0xff] }
  0xf2   :  { %v819_v0 = vmax.f32 %v753_v57, 0.0  ;;  %v3611_v13 = vpop.f32.mrb[12].mxu1  ;;  %v4839_v55 = vpop.f32.mrb[12].mxu0  ;;  %v336_v63 = vadd.f32 %v4772_v11, %v4505_v2  ;;  %v476_v40 = vsel %vm456_vm1, %v450_v18, 0.0 }
  0xf3   :  { %v818_v43 = vmax.f32 %v748_v30, 0.0  ;;  %v763_v3 = vadd.f32 %v3611_v13, %v4645_v7  ;;  %v4845_v49 = vpop.permute.xlu1 %879  ;;  %v4847_v15 = vpop.permute.xlu0 %874  ;;  %v471_v60 = vadd.f32 %v470_v14, %v469_v62  ;;  %v928_v47 = vsel %vm456_vm1, %v912_v24, 0.0 }
  0xf4   :  { %v915_v36 = vmul.f32 %v4765_v16, %v819_v0  ;;  %v757_v9 = vpop.f32.mrb[13].mxu1  ;;  %1821 = vperm.xlu1 %3762, %v1478_v61   ;;  %1816 = vperm.xlu0 %3761, %v1477_v29   ;;  %v4851_v52 = vpop.f32.mrb[13].mxu0  ;;  %v930_v33 = vadd.f32 %v929_v4, %v928_v47  ;;  %v478_v16 = vsel %vm456_vm1, %v451_v48, 0.0  ;;  %v452_v48 = vmul.f32 %v4591_v35, %v356_v50  ;;  %v1482_v35 = vld [vmem:[%s5718_s2 + $0x1e8] sm:$0xff] }
  0xf5   :  { %v914_v2 = vmul.f32 %v4767_v53, %v818_v43  ;;  %v821_v11 = vmax.f32 %v763_v3, 0.0  ;;  %v758_v7 = vadd.f32 %v757_v9, %v4647_v8  ;;  %v473_v51 = vadd.f32 %v472_v21, %v471_v60 }
  0xf6   :  { %v3614_v53 = vpop.f32.mrb[14].mxu1  ;;  %v4865_v57 = vpop.f32.mrb[14].mxu0  ;;  %v358_v8 = vmax.f32 %v336_v63, 0.0  ;;  %v933_v1 = vsel %vm456_vm1, %v915_v36, 0.0  ;;  %v453_v13 = vmul.f32 %v4589_v34, %v357_v6  ;;  %v359_v14 = vmax.f32 %v341_v42, 0.0 }
  0xf7   :  { %v931_v25 = vsel %vm456_vm1, %v914_v2, 0.0  ;;  %v820_v41 = vmax.f32 %v758_v7, 0.0  ;;  %v773_v30 = vadd.f32 %v3614_v53, %v4663_v19  ;;  %v4869_v61 = vpop.permute.xlu1 %889  ;;  %v4871_v29 = vpop.permute.xlu0 %884  ;;  %v475_v18 = vadd.f32 %v4807_v37, %v473_v51  ;;  %v1481_v37 = vld [vmem:[%s5718_s2 + $0x1e0] sm:$0xff] }
  0xf8   :  { %v932_v12 = vadd.f32 %v931_v25, %v930_v33  ;;  %v767_v21 = vpop.f32.mrb[15].mxu1  ;;  %1831 = vperm.xlu1 %3762, %v1480_v56   ;;  %1826 = vperm.xlu0 %3761, %v1479_v22   ;;  %v4876_v62 = vpop.f32.mrb[15].mxu0  ;;  %v917_v4 = vmul.f32 %v4790_v46, %v821_v11  ;;  %v480_v9 = vsel %vm456_vm1, %v452_v48, 0.0  ;;  %v1484_v22 = vld [vmem:[%s5718_s2 + $0x1f8] sm:$0xff] }
  0xf9   :  { %v916_v19 = vmul.f32 %v4792_v54, %v820_v41  ;;  %v823_v24 = vmax.f32 %v773_v30, 0.0  ;;  %v768_v0 = vadd.f32 %v767_v21, %v4665_v20  ;;  %v477_v63 = vadd.f32 %v476_v40, %v475_v18 }
  0xfa   :  { %v934_v43 = vadd.f32 %v933_v1, %v932_v12  ;;  %v3617_v3 = vpop.f32.mrb[16].mxu1  ;;  %v4888_v46 = vpop.f32.mrb[16].mxu0  ;;  %v454_v54 = vmul.f32 %v4609_v45, %v358_v8  ;;  %v937_v45 = vsel %vm456_vm1, %v917_v4, 0.0 }
  0xfb   :  { %v935_v20 = vsel %vm456_vm1, %v916_v19, 0.0  ;;  %v822_v50 = vmax.f32 %v768_v0, 0.0  ;;  %v783_v60 = vadd.f32 %v3617_v3, %v4676_v26  ;;  %v4893_v47 = vpop.permute.xlu1 %899  ;;  %v4895_v36 = vpop.permute.xlu0 %894  ;;  %v479_v34 = vadd.f32 %v478_v16, %v477_v63  ;;  %v1925_v0 = vld [vmem:[%s5717_s1 + $0x208] sm:$0xff] }
  0xfc   :  { %v936_v6 = vadd.f32 %v935_v20, %v934_v43  ;;  %v919_v33 = vmul.f32 %v4817_v23, %v823_v24  ;;  %v777_v2 = vpop.f32.mrb[17].mxu1  ;;  %1841 = vperm.xlu1 %3762, %v1482_v35   ;;  %1836 = vperm.xlu0 %3761, %v1481_v37   ;;  %v4899_v11 = vpop.f32.mrb[17].mxu0  ;;  %v1483_v23 = vld [vmem:[%s5718_s2 + $0x1f0] sm:$0xff]  ;;  %v482_v16 = vsel %vm456_vm1, %v453_v13, 0.0  ;;  %v484_v18 = vsel %vm456_vm1, %v454_v54, 0.0 }
  0xfd   :  { %v918_v7 = vmul.f32 %v4819_v10, %v822_v50  ;;  %v825_v26 = vmax.f32 %v783_v60, 0.0  ;;  %v778_v56 = vadd.f32 %v777_v2, %v4678_v27  ;;  %v481_v40 = vadd.f32 %v480_v9, %v479_v34 }
  0xfe   :  { %v938_v42 = vadd.f32 %v937_v45, %v936_v6  ;;  %v3620_v51 = vpop.f32.mrb[18].mxu1  ;;  %v4911_v53 = vpop.f32.mrb[18].mxu0  ;;  %v455_v10 = vmul.f32 %v4607_v44, %v359_v14  ;;  %v941_v1 = vsel %vm456_vm1, %v919_v33, 0.0  ;;  %v1924_v14 = vld [vmem:[%s5717_s1 + $0x200] sm:$0xff] }
  0xff   :  { %v939_v8 = vsel %vm456_vm1, %v918_v7, 0.0  ;;  %v824_v27 = vmax.f32 %v778_v56, 0.0  ;;  %v793_v25 = vadd.f32 %v3620_v51, %v4691_v38  ;;  %v4916_v41 = vpop.permute.xlu1 %909  ;;  %v4918_v30 = vpop.permute.xlu0 %904  ;;  %v483_v48 = vadd.f32 %v482_v16, %v481_v40 }
 0x100   :  { %v940_v12 = vadd.f32 %v939_v8, %v938_v42  ;;  %v787_v21 = vpop.f32.mrb[19].mxu1  ;;  %1851 = vperm.xlu1 %3762, %v1484_v22   ;;  %1846 = vperm.xlu0 %3761, %v1483_v23   ;;  %v4922_v4 = vpop.f32.mrb[19].mxu0  ;;  %v921_v44 = vmul.f32 %v4845_v49, %v825_v26  ;;  %v486_v49 = vsel %vm456_vm1, %v455_v10, 0.0 }
 0x101   :  { %v920_v19 = vmul.f32 %v4847_v15, %v824_v27  ;;  %v827_v38 = vmax.f32 %v793_v25, 0.0  ;;  %v788_v24 = vadd.f32 %v787_v21, %v4693_v39  ;;  %v485_v35 = vadd.f32 %v484_v18, %v483_v48  ;;  %v5722_v48 = vld [vmem:[#allocation5_spill] sm:$0xff] }
 0x102   :  { %v942_v37 = vadd.f32 %v941_v1, %v940_v12  ;;  %v3623_v13 = vpop.f32.mrb[20].mxu1  ;;  %v4933_v63 = vpop.f32.mrb[20].mxu0  ;;  %v945_v6 = vsel %vm456_vm1, %v921_v44, 0.0  ;;  %v1928_v21 = vld [vmem:[%s5717_s1 + $0x220] sm:$0xff] }
 0x103   :  { %v943_v15 = vsel %vm456_vm1, %v920_v19, 0.0  ;;  %v826_v43 = vmax.f32 %v788_v24, 0.0  ;;  %v803_v39 = vadd.f32 %v3623_v13, %v4705_v58  ;;  %v4938_v3 = vpop.permute.xlu1 %1021  ;;  %v4940_v54 = vpop.permute.xlu0 %1016  ;;  %v487_v20 = vadd.f32 %v486_v49, %v485_v35  ;;  %v1927_v58 = vld [vmem:[%s5717_s1 + $0x218] sm:$0xff] }
 0x104   :  { %v944_v50 = vadd.f32 %v943_v15, %v942_v37  ;;  %v923_v60 = vmul.f32 %v4869_v61, %v827_v38  ;;  %v797_v9 = vpop.f32.mrb[21].mxu1  ;;  %1963 = vperm.xlu1 %3762, %v1925_v0   ;;  %v4943_v34 = vpop.f32.mrb[21].mxu0  ;;  %1958 = vperm.xlu0 %3761, %v1924_v14   ;;  %v1926_v61 = vld [vmem:[%s5717_s1 + $0x210] sm:$0xff]  ;;  %v1931_v15 = vld [vmem:[%s5717_s1 + $0x238] sm:$0xff] }
 0x105   :  { %v922_v33 = vmul.f32 %v4871_v29, %v826_v43  ;;  %v829_v2 = vmax.f32 %v803_v39, 0.0  ;;  %v798_v45 = vadd.f32 %v797_v9, %v4707_v59  ;;  %v488_v1 = vrot.slane %v487_v20, 4 }
 0x106   :  { %v946_v7 = vadd.f32 %v945_v6, %v944_v50  ;;  %v3626_v26 = vpop.f32.mrb[22].mxu1  ;;  %v4954_v56 = vpop.f32.mrb[22].mxu0  ;;  %v949_v40 = vsel %vm456_vm1, %v923_v60, 0.0  ;;  %v1930_v50 = vld [vmem:[%s5717_s1 + $0x230] sm:$0xff] }
 0x107   :  { %v947_v22 = vsel %vm456_vm1, %v922_v33, 0.0  ;;  %v828_v23 = vmax.f32 %v798_v45, 0.0  ;;  %v813_v29 = vadd.f32 %v3626_v26, %v4722_v28  ;;  %v4958_v16 = vpop.permute.xlu1 %1031  ;;  %v4960_v59 = vpop.permute.xlu0 %1026  ;;  %v925_v8 = vmul.f32 %v4893_v47, %v829_v2  ;;  %v1929_v28 = vld [vmem:[%s5717_s1 + $0x228] sm:$0xff] }
 0x108   :  { %v948_v42 = vadd.f32 %v947_v22, %v946_v7  ;;  %v807_v51 = vpop.f32.mrb[23].mxu1  ;;  %1973 = vperm.xlu1 %3762, %v1927_v58   ;;  %v4963_v10 = vpop.f32.mrb[23].mxu0  ;;  %1968 = vperm.xlu0 %3761, %v1926_v61   ;;  %v489_v43 = vadd.f32 %v488_v1, %v487_v20  ;;  %v1933_v58 = vld [vmem:[%s5717_s1 + $0x248] sm:$0xff]  ;;  %v1932_v61 = vld [vmem:[%s5717_s1 + $0x240] sm:$0xff] }
 0x109   :  { %v924_v27 = vmul.f32 %v4895_v36, %v828_v23  ;;  %v831_v25 = vmax.f32 %v813_v29, 0.0  ;;  %v808_v18 = vadd.f32 %v807_v51, %v5722_v48  ;;  %v953_v13 = vsel %vm456_vm1, %v925_v8, 0.0 }
 0x10a   :  { %v950_v12 = vadd.f32 %v949_v40, %v948_v42  ;;  %v4974_v44 = vpop.f32.mrb[24].mxu1  ;;  %v4976_v19 = vpop.f32.mrb[24].mxu0  ;;  %v490_v7 = vrot.slane %v489_v43, 2 }
 0x10b   :  { %v951_v47 = vsel %vm456_vm1, %v924_v27, 0.0  ;;  %v830_v36 = vmax.f32 %v808_v18, 0.0  ;;  %v4979_v38 = vpop.permute.xlu1 %1041  ;;  %v4981_v24 = vpop.permute.xlu0 %1036  ;;  %v927_v14 = vmul.f32 %v4916_v41, %v831_v25  ;;  %v1935_v27 = vld [vmem:[%s5717_s1 + $0x258] sm:$0xff]  ;;  %v1934_v18 = vld [vmem:[%s5717_s1 + $0x250] sm:$0xff] }
 0x10c   :  { %v952_v0 = vadd.f32 %v951_v47, %v950_v12  ;;  %1983 = vperm.xlu1 %3762, %v1929_v28   ;;  %v4983_v35 = vpop.f32.mrb[25].mxu1  ;;  %v4985_v37 = vpop.f32.mrb[25].mxu0  ;;  %1978 = vperm.xlu0 %3761, %v1928_v21   ;;  %v491_v25 = vadd.f32 %v490_v7, %v489_v43  ;;  %v1939_v7 = vld [vmem:[%s5717_s1 + $0x278] sm:$0xff] }
 0x10d   :  { %v926_v49 = vmul.f32 %v4918_v30, %v830_v36  ;;  %v957_v45 = vsel %vm456_vm1, %v927_v14, 0.0 }
 0x10e   :  { %v954_v39 = vadd.f32 %v953_v13, %v952_v0  ;;  %v4996_v60 = vpop.f32.mrb[26].mxu1  ;;  %v4998_v9 = vpop.f32.mrb[26].mxu0  ;;  %v1937_v13 = vld [vmem:[%s5717_s1 + $0x268] sm:$0xff]  ;;  %v492_v14 = vrot.slane %v491_v25, 1 }
 0x10f   :  { %v955_v6 = vsel %vm456_vm1, %v926_v49, 0.0  ;;  %v5001_v41 = vpop.permute.xlu1 %1051  ;;  %v5003_v30 = vpop.permute.xlu0 %1046 }
 0x110   :  { %v956_v33 = vadd.f32 %v955_v6, %v954_v39  ;;  %1993 = vperm.xlu1 %3762, %v1931_v15   ;;  %v5005_v2 = vpop.f32.mrb[27].mxu1  ;;  %v5007_v20 = vpop.f32.mrb[27].mxu0  ;;  %1988 = vperm.xlu0 %3761, %v1930_v50   ;;  %v1936_v15 = vld [vmem:[%s5717_s1 + $0x260] sm:$0xff] }
 0x112   :  { %v958_v26 = vadd.f32 %v957_v45, %v956_v33  ;;  %v5016_v22 = vpop.f32.mrb[28].mxu1  ;;  %v5018_v23 = vpop.f32.mrb[28].mxu0 }
 0x113   :  { %v5020_v29 = vpop.permute.xlu1 %1061  ;;  %v5022_v40 = vpop.permute.xlu0 %1056 }
 0x114   :  { %v959_v42 = vrot.slane %v958_v26, 4  ;;  %2003 = vperm.xlu1 %3762, %v1933_v58   ;;  %v5024_v51 = vpop.f32.mrb[29].mxu1  ;;  %v5026_v8 = vpop.f32.mrb[29].mxu0  ;;  %1998 = vperm.xlu0 %3761, %v1932_v61   ;;  %v1214_v61 = vadd.f32 %v4786_v32, %v4938_v3 }
 0x116   :  { %v960_v48 = vadd.f32 %v959_v42, %v958_v26  ;;  %v5034_v28 = vpop.f32.mrb[30].mxu1  ;;  %v5036_v1 = vpop.f32.mrb[30].mxu0  ;;  %v493_v26 = vadd.f32 %v492_v14, %v491_v25  ;;  %v1209_v42 = vadd.f32 %v4798_v5, %v4940_v54  ;;  %v1224_v5 = vadd.f32 %v4812_v31, %v4958_v16  ;;  %v1941_v54 = vld [vmem:[%s5718_s2 + $0x208] sm:$0xff] }
 0x117   :  { %v5038_v12 = vpop.permute.xlu1 %1071  ;;  %v5040_v21 = vpop.permute.xlu0 %1066  ;;  %v1288_v14 = vmax.f32 %v1214_v61, 0.0 }
 0x118   :  { %v961_v47 = vrot.slane %v960_v48, 2  ;;  %2013 = vperm.xlu1 %3762, %v1935_v27   ;;  %v5042_v36 = vpop.f32.mrb[31].mxu1  ;;  %v5044_v0 = vpop.f32.mrb[31].mxu0  ;;  %2008 = vperm.xlu0 %3761, %v1934_v18  }
 0x11a   :  { %v962_v49 = vadd.f32 %v961_v47, %v960_v48  ;;  %v5052_v43 = vpop.f32.mrb[32].mxu1  ;;  %v5054_v39 = vpop.f32.mrb[32].mxu0  ;;  %v1938_v48 = vld [vmem:[%s5717_s1 + $0x270] sm:$0xff] }
 0x11b   :  { %v5056_v50 = vpop.permute.xlu1 %1081  ;;  %v5058_v6 = vpop.permute.xlu0 %1076 }
 0x11c   :  { %v963_v33 = vrot.slane %v962_v49, 1  ;;  %2023 = vperm.xlu1 %3762, %v1937_v13   ;;  %v5060_v45 = vpop.f32.mrb[33].mxu1  ;;  %v5062_v58 = vpop.f32.mrb[33].mxu0  ;;  %2018 = vperm.xlu0 %3761, %v1936_v15  }
 0x11d   :  { %5723 = vst [vmem:[#allocation5_spill] sm:$0xff] %v5062_v58 }
 0x11e   :  { %v964_v27 = vadd.f32 %v963_v33, %v962_v49  ;;  %v5074_v18 = vpop.f32.mrb[34].mxu1  ;;  %v5076_v47 = vpop.f32.mrb[34].mxu0  ;;  %v1287_v49 = vmax.f32 %v1209_v42, 0.0  ;;  %v1219_v33 = vadd.f32 %v4825_v17, %v4960_v59  ;;  %v1290_v42 = vmax.f32 %v1224_v5, 0.0  ;;  %v1943_v59 = vld [vmem:[%s5718_s2 + $0x218] sm:$0xff]  ;;  %v1942_v5 = vld [vmem:[%s5718_s2 + $0x210] sm:$0xff] }
 0x11f   :  { %5724 = vst [vmem:[#allocation6_spill] sm:$0xff] %v5076_v47  ;;  %v5078_v13 = vpop.permute.xlu1 %1091  ;;  %v5080_v15 = vpop.permute.xlu0 %1086  ;;  %v1234_v17 = vadd.f32 %v4839_v55, %v4979_v38 }
 0x120   :  { %2033 = vperm.xlu1 %3762, %v1939_v7   ;;  %v5082_v25 = vpop.f32.mrb[35].mxu1  ;;  %v5084_v32 = vpop.f32.mrb[35].mxu0  ;;  %v5086_v3 = vadd.f32 %v964_v27, %v493_v26  ;;  %2028 = vperm.xlu0 %3761, %v1938_v48   ;;  %v1940_v7 = vld [vmem:[%s5718_s2 + $0x200] sm:$0xff]  ;;  %v1289_v58 = vmax.f32 %v1219_v33, 0.0 }
 0x121   :  { %5725 = vst [vmem:[#allocation7_spill] sm:$0xff] %v5084_v32 }
 0x122   :  { %v5098_v32 = vpop.f32.mrb[36].mxu1  ;;  %v5100_v26 = vpop.f32.mrb[36].mxu0 }
 0x123   :  { %5726 = vst [vmem:[#allocation8_spill] sm:$0xff] %v5100_v26  ;;  %v1311_v27 = vpop.permute.xlu1 %1310  ;;  %v1306_v31 = vpop.permute.xlu0 %1305  ;;  %v1229_v26 = vadd.f32 %v4851_v52, %v4981_v24  ;;  %v1292_v24 = vmax.f32 %v1234_v17, 0.0 }
 0x124   :  { %v1384_v16 = vmul.f32 %v1311_v27, %v1288_v14  ;;  %v1383_v48 = vmul.f32 %v1306_v31, %v1287_v49  ;;  %2252 = vperm.xlu1 %3762, %v1941_v54   ;;  %v5102_v47 = vpop.f32.mrb[37].mxu1  ;;  %v5104_v61 = vpop.f32.mrb[37].mxu0  ;;  %2247 = vperm.xlu0 %3761, %v1940_v7  }
 0x125   :  { %5727 = vst [vmem:[#allocation9_spill] sm:$0xff] %v5104_v61 }
 0x126   :  { %v1400_v14 = vsel %vm456_vm1, %v1384_v16, 0.0  ;;  %v1399_v54 = vsel %vm456_vm1, %v1383_v48, 0.0  ;;  %v5118_v49 = vpop.f32.mrb[38].mxu1  ;;  %v5120_v55 = vpop.f32.mrb[38].mxu0  ;;  %v1945_v16 = vld [vmem:[%s5718_s2 + $0x228] sm:$0xff]  ;;  %v1291_v48 = vmax.f32 %v1229_v26, 0.0 }
 0x127   :  { %5728 = vst [vmem:[#allocation10_spill] sm:$0xff] %v5120_v55  ;;  %v1401_v38 = vadd.f32 %v1400_v14, %v1399_v54  ;;  %v1321_v7 = vpop.permute.xlu1 %1320  ;;  %v1316_v27 = vpop.permute.xlu0 %1315  ;;  %v1244_v55 = vadd.f32 %v4865_v57, %v5001_v41  ;;  %v1239_v14 = vadd.f32 %v4876_v62, %v5003_v30  ;;  %v1254_v57 = vadd.f32 %v4888_v46, %v5020_v29  ;;  %v1947_v62 = vld [vmem:[%s5718_s2 + $0x238] sm:$0xff] }
 0x128   :  { %v1386_v31 = vmul.f32 %v1321_v7, %v1290_v42  ;;  %v1385_v33 = vmul.f32 %v1316_v27, %v1289_v58  ;;  %2262 = vperm.xlu1 %3762, %v1943_v59   ;;  %v5122_v61 = vpop.f32.mrb[39].mxu1  ;;  %v5124_v52 = vpop.f32.mrb[39].mxu0  ;;  %2257 = vperm.xlu0 %3761, %v1942_v5   ;;  %v1944_v42 = vld [vmem:[%s5718_s2 + $0x220] sm:$0xff] }
 0x129   :  { %v1294_v30 = vmax.f32 %v1244_v55, 0.0  ;;  %v1293_v26 = vmax.f32 %v1239_v14, 0.0  ;;  %v1264_v14 = vadd.f32 %v4911_v53, %v5038_v12  ;;  %v1274_v53 = vadd.f32 %v4933_v63, %v5056_v50 }
 0x12a   :  { %v1402_v58 = vsel %vm456_vm1, %v1385_v33, 0.0  ;;  %v1404_v5 = vsel %vm456_vm1, %v1386_v31, 0.0  ;;  %v1946_v31 = vld [vmem:[%s5718_s2 + $0x230] sm:$0xff] }
 0x12b   :  { %v1403_v59 = vadd.f32 %v1402_v58, %v1401_v38  ;;  %v1331_v17 = vpop.permute.xlu1 %1330  ;;  %v1326_v54 = vpop.permute.xlu0 %1325  ;;  %v1249_v38 = vadd.f32 %v4899_v11, %v5022_v40  ;;  %v1949_v11 = vld [vmem:[%s5718_s2 + $0x248] sm:$0xff] }
 0x12c   :  { %v1388_v7 = vmul.f32 %v1331_v17, %v1292_v24  ;;  %v1387_v27 = vmul.f32 %v1326_v54, %v1291_v48  ;;  %2272 = vperm.xlu1 %3762, %v1945_v16   ;;  %2267 = vperm.xlu0 %3761, %v1944_v42   ;;  %v1296_v42 = vmax.f32 %v1254_v57, 0.0  ;;  %v1948_v54 = vld [vmem:[%s5718_s2 + $0x240] sm:$0xff] }
 0x12d   :  { %v1405_v41 = vadd.f32 %v1404_v5, %v1403_v59  ;;  %v1295_v40 = vmax.f32 %v1249_v38, 0.0  ;;  %v1259_v59 = vadd.f32 %v4922_v4, %v5040_v21  ;;  %v1951_v4 = vld [vmem:[%s5718_s2 + $0x258] sm:$0xff]  ;;  %v1298_v21 = vmax.f32 %v1264_v14, 0.0 }
 0x12e   :  { %v1406_v33 = vsel %vm456_vm1, %v1387_v27, 0.0  ;;  %v1408_v29 = vsel %vm456_vm1, %v1388_v7, 0.0 }
 0x12f   :  { %v1407_v24 = vadd.f32 %v1406_v33, %v1405_v41  ;;  %v1341_v16 = vpop.permute.xlu1 %1340  ;;  %v1336_v46 = vpop.permute.xlu0 %1335  ;;  %v1950_v33 = vld [vmem:[%s5718_s2 + $0x250] sm:$0xff] }
 0x130   :  { %v1390_v48 = vmul.f32 %v1341_v16, %v1294_v30  ;;  %v1389_v58 = vmul.f32 %v1336_v46, %v1293_v26  ;;  %2282 = vperm.xlu1 %3762, %v1947_v62   ;;  %2277 = vperm.xlu0 %3761, %v1946_v31   ;;  %v1297_v30 = vmax.f32 %v1259_v59, 0.0  ;;  %v1269_v26 = vadd.f32 %v4943_v34, %v5058_v6  ;;  %v1953_v34 = vld [vmem:[%s5718_s2 + $0x268] sm:$0xff] }
 0x131   :  { %v1409_v55 = vadd.f32 %v1408_v29, %v1407_v24  ;;  %v1300_v29 = vmax.f32 %v1274_v53, 0.0 }
 0x132   :  { %v1410_v17 = vsel %vm456_vm1, %v1389_v58, 0.0  ;;  %v1412_v57 = vsel %vm456_vm1, %v1390_v48, 0.0  ;;  %v1299_v6 = vmax.f32 %v1269_v26, 0.0  ;;  %v1284_v58 = vadd.f32 %v4954_v56, %v5078_v13  ;;  %v1955_v56 = vld [vmem:[%s5718_s2 + $0x278] sm:$0xff] }
 0x133   :  { %v1411_v5 = vadd.f32 %v1410_v17, %v1409_v55  ;;  %v1351_v7 = vpop.permute.xlu1 %1350  ;;  %v1346_v27 = vpop.permute.xlu0 %1345 }
 0x134   :  { %v1392_v41 = vmul.f32 %v1351_v7, %v1296_v42  ;;  %v1391_v62 = vmul.f32 %v1346_v27, %v1295_v40  ;;  %2292 = vperm.xlu1 %3762, %v1949_v11   ;;  %2287 = vperm.xlu0 %3761, %v1948_v54   ;;  %v1279_v42 = vadd.f32 %v4963_v10, %v5080_v15  ;;  %v1952_v11 = vld [vmem:[%s5718_s2 + $0x260] sm:$0xff]  ;;  %v1302_v10 = vmax.f32 %v1284_v58, 0.0  ;;  %v1954_v27 = vld [vmem:[%s5718_s2 + $0x270] sm:$0xff] }
 0x135   :  { %v1413_v12 = vadd.f32 %v1412_v57, %v1411_v5 }
 0x136   :  { %v1414_v38 = vsel %vm456_vm1, %v1391_v62, 0.0  ;;  %v1416_v50 = vsel %vm456_vm1, %v1392_v41, 0.0  ;;  %v1301_v13 = vmax.f32 %v1279_v42, 0.0 }
 0x137   :  { %v1415_v31 = vadd.f32 %v1414_v38, %v1413_v12  ;;  %v1361_v24 = vpop.permute.xlu1 %1360  ;;  %v1356_v63 = vpop.permute.xlu0 %1355  ;;  %v2395_v38 = vld [vmem:[%s5717_s1 + $0x280] sm:$0xff] }
 0x138   :  { %v1394_v16 = vmul.f32 %v1361_v24, %v1298_v21  ;;  %v1393_v46 = vmul.f32 %v1356_v63, %v1297_v30  ;;  %2302 = vperm.xlu1 %3762, %v1951_v4   ;;  %2297 = vperm.xlu0 %3761, %v1950_v33   ;;  %v2396_v30 = vld [vmem:[%s5717_s1 + $0x288] sm:$0xff] }
 0x139   :  { %v1417_v48 = vadd.f32 %v1416_v50, %v1415_v31 }
 0x13a   :  { %v1418_v55 = vsel %vm456_vm1, %v1393_v46, 0.0  ;;  %v1420_v17 = vsel %vm456_vm1, %v1394_v16, 0.0  ;;  %v2398_v16 = vld [vmem:[%s5717_s1 + $0x298] sm:$0xff]  ;;  %v5209_v46 = vpop.f32.mrb[40].mxu1 }
 0x13b   :  { %v1419_v40 = vadd.f32 %v1418_v55, %v1417_v48  ;;  %v1371_v14 = vpop.permute.xlu1 %1370  ;;  %v1366_v59 = vpop.permute.xlu0 %1365  ;;  %v2400_v55 = vld [vmem:[%s5717_s1 + $0x2a8] sm:$0xff] }
 0x13c   :  { %v1396_v54 = vmul.f32 %v1371_v14, %v1300_v29  ;;  %v1395_v5 = vmul.f32 %v1366_v59, %v1299_v6  ;;  %2312 = vperm.xlu1 %3762, %v1953_v34   ;;  %2307 = vperm.xlu0 %3761, %v1952_v11   ;;  %v2397_v29 = vld [vmem:[%s5717_s1 + $0x290] sm:$0xff]  ;;  %v5214_v48 = vpop.f32.mrb[41].mxu1 }
 0x13d   :  { %v1421_v7 = vadd.f32 %v1420_v17, %v1419_v40  ;;  %v5221_v11 = vpop.f32.mrb[42].mxu1  ;;  %v2399_v40 = vld [vmem:[%s5717_s1 + $0x2a0] sm:$0xff] }
 0x13e   :  { %v1422_v15 = vsel %vm456_vm1, %v1395_v5, 0.0  ;;  %v1424_v53 = vsel %vm456_vm1, %v1396_v54, 0.0  ;;  %v5226_v14 = vpop.f32.mrb[43].mxu1 }
 0x13f   :  { %v1423_v57 = vadd.f32 %v1422_v15, %v1421_v7  ;;  %v1381_v41 = vpop.permute.xlu1 %1380  ;;  %v1376_v62 = vpop.permute.xlu0 %1375  ;;  %v2402_v7 = vld [vmem:[%s5717_s1 + $0x2b8] sm:$0xff] }
 0x140   :  { %v1398_v12 = vmul.f32 %v1381_v41, %v1302_v10  ;;  %v1397_v4 = vmul.f32 %v1376_v62, %v1301_v13  ;;  %2322 = vperm.xlu1 %3762, %v1955_v56   ;;  %2317 = vperm.xlu0 %3761, %v1954_v27   ;;  %v5235_v56 = vpop.f32.mrb[44].mxu1  ;;  %v2401_v10 = vld [vmem:[%s5717_s1 + $0x2b0] sm:$0xff]  ;;  %v2404_v62 = vld [vmem:[%s5717_s1 + $0x2c8] sm:$0xff] }
 0x141   :  { %v1425_v21 = vadd.f32 %v1424_v53, %v1423_v57  ;;  %v5240_v13 = vpop.f32.mrb[45].mxu1 }
 0x142   :  { %v1426_v26 = vsel %vm456_vm1, %v1397_v4, 0.0  ;;  %v1428_v63 = vsel %vm456_vm1, %v1398_v12, 0.0  ;;  %v5249_v53 = vpop.f32.mrb[46].mxu1  ;;  %v2403_v12 = vld [vmem:[%s5717_s1 + $0x2c0] sm:$0xff] }
 0x143   :  { %v1427_v33 = vadd.f32 %v1426_v26, %v1425_v21  ;;  %v5201_v31 = vpop.permute.xlu1 %1492  ;;  %v5203_v24 = vpop.permute.xlu0 %1487 }
 0x144   :  { %2434 = vperm.xlu1 %3762, %v2396_v30   ;;  %2429 = vperm.xlu0 %3761, %v2395_v38   ;;  %v5254_v4 = vpop.f32.mrb[47].mxu1  ;;  %v2406_v38 = vld [vmem:[%s5717_s1 + $0x2d8] sm:$0xff] }
 0x145   :  { %v1429_v50 = vadd.f32 %v1428_v63, %v1427_v33  ;;  %v5266_v33 = vpop.f32.mrb[48].mxu1  ;;  %v2405_v63 = vld [vmem:[%s5717_s1 + $0x2d0] sm:$0xff] }
 0x147   :  { %v1430_v34 = vrot.slane %v1429_v50, 4  ;;  %v1503_v6 = vpop.permute.xlu1 %1502  ;;  %v5216_v58 = vpop.permute.xlu0 %1497 }
 0x148   :  { %2444 = vperm.xlu1 %3762, %v2398_v16   ;;  %2439 = vperm.xlu0 %3761, %v2397_v29  }
 0x149   :  { %v1431_v42 = vadd.f32 %v1430_v34, %v1429_v50  ;;  %v5271_v50 = vpop.f32.mrb[49].mxu1 }
 0x14a   :  { %v5280_v34 = vpop.f32.mrb[50].mxu1 }
 0x14b   :  { %v1432_v59 = vrot.slane %v1431_v42, 2  ;;  %v5228_v17 = vpop.permute.xlu1 %1512  ;;  %v5230_v54 = vpop.permute.xlu0 %1507 }
 0x14c   :  { %2454 = vperm.xlu1 %3762, %v2400_v55   ;;  %2449 = vperm.xlu0 %3761, %v2399_v40   ;;  %v5285_v55 = vpop.f32.mrb[51].mxu1 }
 0x14d   :  { %v1433_v5 = vadd.f32 %v1432_v59, %v1431_v42  ;;  %v2407_v42 = vld [vmem:[%s5717_s1 + $0x2e0] sm:$0xff] }
 0x14f   :  { %v1434_v15 = vrot.slane %v1433_v5, 1  ;;  %v5242_v27 = vpop.permute.xlu1 %1522  ;;  %v5244_v57 = vpop.permute.xlu0 %1517 }
 0x150   :  { %2464 = vperm.xlu1 %3762, %v2402_v7   ;;  %2459 = vperm.xlu0 %3761, %v2401_v10   ;;  %v5294_v7 = vpop.f32.mrb[52].mxu1  ;;  %v1685_v10 = vadd.f32 %v4974_v44, %v5201_v31  ;;  %v2412_v44 = vld [vmem:[%s5718_s2 + $0x288] sm:$0xff] }
 0x151   :  { %v1435_v41 = vadd.f32 %v1434_v15, %v1433_v5  ;;  %v2410_v5 = vld [vmem:[%s5717_s1 + $0x2f8] sm:$0xff]  ;;  %5729 = vst [vmem:[#allocation11_spill] sm:$0xff] %v5294_v7  ;;  %v1680_v15 = vadd.f32 %v4983_v35, %v5203_v24 }
 0x152   :  { %v1759_v35 = vmax.f32 %v1685_v10, 0.0  ;;  %v1700_v10 = vadd.f32 %v5024_v51, %v5230_v54  ;;  %v2416_v51 = vld [vmem:[%s5718_s2 + $0x2a8] sm:$0xff] }
 0x153   :  { %v5256_v21 = vpop.permute.xlu1 %1532  ;;  %v5258_v30 = vpop.permute.xlu0 %1527  ;;  %v5261_v26 = vadd.f32 %v1435_v41, %v5086_v3  ;;  %v2408_v3 = vld [vmem:[%s5717_s1 + $0x2e8] sm:$0xff]  ;;  %v2409_v41 = vld [vmem:[%s5717_s1 + $0x2f0] sm:$0xff]  ;;  %v1758_v24 = vmax.f32 %v1680_v15, 0.0 }
 0x154   :  { %2474 = vperm.xlu1 %3762, %v2404_v62   ;;  %2469 = vperm.xlu0 %3761, %v2403_v12   ;;  %v5303_v62 = vpop.f32.mrb[53].mxu1  ;;  %v1762_v54 = vmax.f32 %v1700_v10, 0.0 }
 0x155   :  { %5730 = vst [vmem:[#allocation12_spill] sm:$0xff] %v5303_v62  ;;  %v5313_v31 = vpop.f32.mrb[54].mxu1 }
 0x156   :  { %5731 = vst [vmem:[#allocation13_spill] sm:$0xff] %v5313_v31  ;;  %v5320_v62 = vpop.f32.mrb[55].mxu1  ;;  %v1705_v31 = vadd.f32 %v5016_v22, %v5228_v17 }
 0x157   :  { %v5273_v16 = vpop.permute.xlu1 %1542  ;;  %v5275_v29 = vpop.permute.xlu0 %1537  ;;  %5732 = vst [vmem:[#allocation14_spill] sm:$0xff] %v5320_v62 }
 0x158   :  { %2484 = vperm.xlu1 %3762, %v2406_v38   ;;  %2479 = vperm.xlu0 %3761, %v2405_v63   ;;  %v1695_v63 = vadd.f32 %v4996_v60, %v1503_v6 }
 0x15a   :  { %v1761_v7 = vmax.f32 %v1695_v63, 0.0  ;;  %v2413_v63 = vld [vmem:[%s5718_s2 + $0x290] sm:$0xff] }
 0x15b   :  { %v5287_v40 = vpop.permute.xlu1 %1552  ;;  %v5289_v59 = vpop.permute.xlu0 %1547 }
 0x15c   :  { %2494 = vperm.xlu1 %3762, %v2408_v3   ;;  %2489 = vperm.xlu0 %3761, %v2407_v42   ;;  %v1690_v3 = vadd.f32 %v5005_v2, %v5216_v58  ;;  %v2411_v42 = vld [vmem:[%s5718_s2 + $0x280] sm:$0xff]  ;;  %v2414_v2 = vld [vmem:[%s5718_s2 + $0x298] sm:$0xff] }
 0x15e   :  { %v1760_v58 = vmax.f32 %v1690_v3, 0.0  ;;  %v1715_v3 = vadd.f32 %v5034_v28, %v5242_v27  ;;  %v1725_v28 = vadd.f32 %v5052_v43, %v5256_v21 }
 0x15f   :  { %v5305_v12 = vpop.permute.xlu1 %1562  ;;  %v5307_v38 = vpop.permute.xlu0 %1557 }
 0x160   :  { %2504 = vperm.xlu1 %3762, %v2410_v5   ;;  %2499 = vperm.xlu0 %3761, %v2409_v41  }
 0x163   :  { %v1782_v5 = vpop.permute.xlu1 %1781  ;;  %v1777_v60 = vpop.permute.xlu0 %1776 }
 0x164   :  { %v1855_v6 = vmul.f32 %v1782_v5, %v1759_v35  ;;  %v1854_v41 = vmul.f32 %v1777_v60, %v1758_v24  ;;  %2723 = vperm.xlu1 %3762, %v2412_v44   ;;  %2718 = vperm.xlu0 %3761, %v2411_v42   ;;  %v1763_v42 = vmax.f32 %v1705_v31, 0.0  ;;  %v1710_v5 = vadd.f32 %v5042_v36, %v5244_v57  ;;  %v2418_v36 = vld [vmem:[%s5718_s2 + $0x2b8] sm:$0xff] }
 0x165   :  { %v1765_v57 = vmax.f32 %v1715_v3, 0.0  ;;  %v1730_v3 = vadd.f32 %v5082_v25, %v5275_v29  ;;  %v2422_v25 = vld [vmem:[%s5718_s2 + $0x2d8] sm:$0xff] }
 0x166   :  { %v1871_v15 = vsel %vm456_vm1, %v1855_v6, 0.0  ;;  %v1870_v62 = vsel %vm456_vm1, %v1854_v41, 0.0  ;;  %v1764_v10 = vmax.f32 %v1710_v5, 0.0 }
 0x167   :  { %v1872_v44 = vadd.f32 %v1871_v15, %v1870_v62  ;;  %v1792_v35 = vpop.permute.xlu1 %1791  ;;  %v1787_v22 = vpop.permute.xlu0 %1786  ;;  %v1720_v15 = vadd.f32 %v5060_v45, %v5258_v30  ;;  %v2420_v45 = vld [vmem:[%s5718_s2 + $0x2c8] sm:$0xff] }
 0x168   :  { %v1857_v17 = vmul.f32 %v1792_v35, %v1761_v7  ;;  %v1856_v24 = vmul.f32 %v1787_v22, %v1760_v58  ;;  %2733 = vperm.xlu1 %3762, %v2414_v2   ;;  %2728 = vperm.xlu0 %3761, %v2413_v63   ;;  %v2415_v7 = vld [vmem:[%s5718_s2 + $0x2a0] sm:$0xff] }
 0x169   :  { %v1766_v30 = vmax.f32 %v1720_v15, 0.0 }
 0x16a   :  { %v1873_v62 = vsel %vm456_vm1, %v1856_v24, 0.0  ;;  %v1875_v41 = vsel %vm456_vm1, %v1857_v17, 0.0 }
 0x16b   :  { %v1874_v60 = vadd.f32 %v1873_v62, %v1872_v44  ;;  %v1802_v31 = vpop.permute.xlu1 %1801  ;;  %v1797_v6 = vpop.permute.xlu0 %1796  ;;  %v2417_v44 = vld [vmem:[%s5718_s2 + $0x2b0] sm:$0xff]  ;;  %v2419_v62 = vld [vmem:[%s5718_s2 + $0x2c0] sm:$0xff] }
 0x16c   :  { %v1859_v2 = vmul.f32 %v1802_v31, %v1763_v42  ;;  %v1858_v58 = vmul.f32 %v1797_v6, %v1762_v54  ;;  %2743 = vperm.xlu1 %3762, %v2416_v51   ;;  %2738 = vperm.xlu0 %3761, %v2415_v7   ;;  %v1767_v42 = vmax.f32 %v1725_v28, 0.0  ;;  %v1735_v54 = vadd.f32 %v5074_v18, %v5273_v16 }
 0x16d   :  { %v1876_v27 = vadd.f32 %v1875_v41, %v1874_v60  ;;  %v1745_v18 = vadd.f32 %v5098_v32, %v5287_v40  ;;  %v1740_v28 = vadd.f32 %v5102_v47, %v5289_v59  ;;  %v2424_v47 = vld [vmem:[%s5718_s2 + $0x2e8] sm:$0xff] }
 0x16e   :  { %v1877_v63 = vsel %vm456_vm1, %v1858_v58, 0.0  ;;  %v1879_v21 = vsel %vm456_vm1, %v1859_v2, 0.0  ;;  %v1769_v29 = vmax.f32 %v1735_v54, 0.0  ;;  %v1768_v58 = vmax.f32 %v1730_v3, 0.0 }
 0x16f   :  { %v1878_v35 = vadd.f32 %v1877_v63, %v1876_v27  ;;  %v1812_v22 = vpop.permute.xlu1 %1811  ;;  %v1807_v43 = vpop.permute.xlu0 %1806  ;;  %v1770_v59 = vmax.f32 %v1740_v28, 0.0 }
 0x170   :  { %v1861_v17 = vmul.f32 %v1812_v22, %v1765_v57  ;;  %v1860_v24 = vmul.f32 %v1807_v43, %v1764_v10  ;;  %2753 = vperm.xlu1 %3762, %v2418_v36   ;;  %2748 = vperm.xlu0 %3761, %v2417_v44   ;;  %v2421_v36 = vld [vmem:[%s5718_s2 + $0x2d0] sm:$0xff]  ;;  %v1771_v44 = vmax.f32 %v1745_v18, 0.0  ;;  %v1755_v22 = vadd.f32 %v5118_v49, %v5305_v12  ;;  %v2867_v18 = vld [vmem:[%s5717_s1 + $0x308] sm:$0xff] }
 0x171   :  { %v1880_v51 = vadd.f32 %v1879_v21, %v1878_v35  ;;  %v1750_v43 = vadd.f32 %v5122_v61, %v5307_v38  ;;  %v2426_v61 = vld [vmem:[%s5718_s2 + $0x2f8] sm:$0xff] }
 0x172   :  { %v1881_v5 = vsel %vm456_vm1, %v1860_v24, 0.0  ;;  %v1883_v6 = vsel %vm456_vm1, %v1861_v17, 0.0  ;;  %v2423_v17 = vld [vmem:[%s5718_s2 + $0x2e0] sm:$0xff]  ;;  %v1773_v49 = vmax.f32 %v1755_v22, 0.0  ;;  %v2883_v22 = vld [vmem:[%s5718_s2 + $0x308] sm:$0xff] }
 0x173   :  { %v1882_v7 = vadd.f32 %v1881_v5, %v1880_v51  ;;  %v1822_v60 = vpop.permute.xlu1 %1821  ;;  %v1817_v31 = vpop.permute.xlu0 %1816  ;;  %v1772_v12 = vmax.f32 %v1750_v43, 0.0  ;;  %v2425_v5 = vld [vmem:[%s5718_s2 + $0x2f0] sm:$0xff] }
 0x174   :  { %v1863_v41 = vmul.f32 %v1822_v60, %v1767_v42  ;;  %v1862_v2 = vmul.f32 %v1817_v31, %v1766_v30  ;;  %2763 = vperm.xlu1 %3762, %v2420_v45   ;;  %2758 = vperm.xlu0 %3761, %v2419_v62  }
 0x175   :  { %v1884_v16 = vadd.f32 %v1883_v6, %v1882_v7 }
 0x176   :  { %v1885_v27 = vsel %vm456_vm1, %v1862_v2, 0.0  ;;  %v1887_v40 = vsel %vm456_vm1, %v1863_v41, 0.0 }
 0x177   :  { %v1886_v57 = vadd.f32 %v1885_v27, %v1884_v16  ;;  %v1832_v10 = vpop.permute.xlu1 %1831  ;;  %v1827_v32 = vpop.permute.xlu0 %1826 }
 0x178   :  { %v1865_v15 = vmul.f32 %v1832_v10, %v1769_v29  ;;  %v1864_v63 = vmul.f32 %v1827_v32, %v1768_v58  ;;  %2773 = vperm.xlu1 %3762, %v2422_v25   ;;  %2768 = vperm.xlu0 %3761, %v2421_v36   ;;  %v2866_v25 = vld [vmem:[%s5717_s1 + $0x300] sm:$0xff]  ;;  %v2869_v32 = vld [vmem:[%s5717_s1 + $0x318] sm:$0xff] }
 0x179   :  { %v1888_v35 = vadd.f32 %v1887_v40, %v1886_v57  ;;  %v5419_v40 = vpop.f32.mrb[40].mxu0 }
 0x17a   :  { %v1889_v21 = vsel %vm456_vm1, %v1864_v63, 0.0  ;;  %v1891_v45 = vsel %vm456_vm1, %v1865_v15, 0.0  ;;  %v2868_v15 = vld [vmem:[%s5717_s1 + $0x310] sm:$0xff]  ;;  %v5424_v63 = vpop.f32.mrb[41].mxu0 }
 0x17b   :  { %v1890_v24 = vadd.f32 %v1889_v21, %v1888_v35  ;;  %v1842_v42 = vpop.permute.xlu1 %1841  ;;  %v1837_v51 = vpop.permute.xlu0 %1836  ;;  %v2882_v21 = vld [vmem:[%s5718_s2 + $0x300] sm:$0xff] }
 0x17c   :  { %v1867_v30 = vmul.f32 %v1842_v42, %v1771_v44  ;;  %v1866_v54 = vmul.f32 %v1837_v51, %v1770_v59  ;;  %2783 = vperm.xlu1 %3762, %v2424_v47   ;;  %2778 = vperm.xlu0 %3761, %v2423_v17   ;;  %v5435_v43 = vpop.f32.mrb[42].mxu0 }
 0x17d   :  { %v1892_v3 = vadd.f32 %v1891_v45, %v1890_v24  ;;  %v5440_v17 = vpop.f32.mrb[43].mxu0 }
 0x17e   :  { %v1893_v38 = vsel %vm456_vm1, %v1866_v54, 0.0  ;;  %v1895_v31 = vsel %vm456_vm1, %v1867_v30, 0.0  ;;  %v2884_v30 = vld [vmem:[%s5718_s2 + $0x310] sm:$0xff]  ;;  %v2870_v54 = vld [vmem:[%s5717_s1 + $0x320] sm:$0xff] }
 0x17f   :  { %v1894_v62 = vadd.f32 %v1893_v38, %v1892_v3  ;;  %v1852_v7 = vpop.permute.xlu1 %1851  ;;  %v1847_v60 = vpop.permute.xlu0 %1846  ;;  %v2885_v38 = vld [vmem:[%s5718_s2 + $0x318] sm:$0xff] }
 0x180   :  { %v1869_v6 = vmul.f32 %v1852_v7, %v1773_v49  ;;  %v1868_v41 = vmul.f32 %v1847_v60, %v1772_v12  ;;  %2793 = vperm.xlu1 %3762, %v2426_v61   ;;  %2788 = vperm.xlu0 %3761, %v2425_v5   ;;  %v5463_v5 = vpop.f32.mrb[44].mxu0 }
 0x181   :  { %v1896_v2 = vadd.f32 %v1895_v31, %v1894_v62  ;;  %v2871_v62 = vld [vmem:[%s5717_s1 + $0x328] sm:$0xff]  ;;  %v5468_v7 = vpop.f32.mrb[45].mxu0 }
 0x182   :  { %v1897_v16 = vsel %vm456_vm1, %v1868_v41, 0.0  ;;  %v1899_v28 = vsel %vm456_vm1, %v1869_v6, 0.0  ;;  %v5733_v6 = vld [vmem:[#allocation5_spill] sm:$0xff] }
 0x183   :  { %v1898_v29 = vadd.f32 %v1897_v16, %v1896_v2  ;;  %v1964_v58 = vpop.permute.xlu1 %1963  ;;  %v1959_v36 = vpop.permute.xlu0 %1958  ;;  %v2886_v2 = vld [vmem:[%s5718_s2 + $0x320] sm:$0xff] }
 0x184   :  { %v5411_v27 = vadd.f32 %v4976_v19, %v1964_v58  ;;  %2905 = vperm.xlu1 %3762, %v2867_v18   ;;  %v5414_v10 = vadd.f32 %v4985_v37, %v1959_v36  ;;  %2900 = vperm.xlu0 %3761, %v2866_v25   ;;  %v2872_v18 = vld [vmem:[%s5717_s1 + $0x330] sm:$0xff]  ;;  %v5494_v36 = vpop.f32.mrb[46].mxu0 }
 0x185   :  { %v1900_v57 = vadd.f32 %v1899_v28, %v1898_v29  ;;  %v5735_v29 = vld [vmem:[#allocation7_spill] sm:$0xff]  ;;  %v2887_v28 = vld [vmem:[%s5718_s2 + $0x328] sm:$0xff] }
 0x187   :  { %v1901_v19 = vrot.slane %v1900_v57, 4  ;;  %v1974_v44 = vpop.permute.xlu1 %1973  ;;  %v1969_v37 = vpop.permute.xlu0 %1968 }
 0x188   :  { %v5427_v35 = vadd.f32 %v4998_v9, %v1974_v44  ;;  %2915 = vperm.xlu1 %3762, %v2869_v32   ;;  %v5430_v59 = vadd.f32 %v5007_v20, %v1969_v37  ;;  %2910 = vperm.xlu0 %3761, %v2868_v15   ;;  %v5499_v32 = vpop.f32.mrb[47].mxu0 }
 0x189   :  { %v1902_v47 = vadd.f32 %v1901_v19, %v1900_v57  ;;  %v2873_v57 = vld [vmem:[%s5717_s1 + $0x338] sm:$0xff] }
 0x18a   :  { %v5736_v19 = vld [vmem:[#allocation8_spill] sm:$0xff] }
 0x18b   :  { %v1903_v9 = vrot.slane %v1902_v47, 2  ;;  %v1984_v24 = vpop.permute.xlu1 %1983  ;;  %v1979_v20 = vpop.permute.xlu0 %1978 }
 0x18c   :  { %v5443_v42 = vadd.f32 %v5018_v23, %v1984_v24  ;;  %3194 = vperm.xlu1 %3762, %v2883_v22   ;;  %v5446_v45 = vadd.f32 %v5026_v8, %v1979_v20  ;;  %3189 = vperm.xlu0 %3761, %v2882_v21   ;;  %v2888_v21 = vld [vmem:[%s5718_s2 + $0x330] sm:$0xff] }
 0x18d   :  { %v1904_v51 = vadd.f32 %v1903_v9, %v1902_v47  ;;  %v5737_v47 = vld [vmem:[#allocation9_spill] sm:$0xff]  ;;  %v5738_v20 = vld [vmem:[#allocation10_spill] sm:$0xff] }
 0x18e   :  { %v2874_v9 = vld [vmem:[%s5717_s1 + $0x340] sm:$0xff] }
 0x18f   :  { %v1905_v3 = vrot.slane %v1904_v51, 1  ;;  %v1994_v61 = vpop.permute.xlu1 %1993  ;;  %v1989_v49 = vpop.permute.xlu0 %1988 }
 0x190   :  { %v5455_v23 = vadd.f32 %v5036_v1, %v1994_v61  ;;  %3199 = vperm.xlu1 %3762, %v2884_v30   ;;  %v5458_v8 = vadd.f32 %v5044_v0, %v1989_v49  ;;  %2920 = vperm.xlu0 %3761, %v2870_v54   ;;  %v5522_v61 = vpop.f32.mrb[48].mxu0  ;;  %v2230_v49 = vmax.f32 %v5411_v27, 0.0  ;;  %v2232_v27 = vmax.f32 %v5427_v35, 0.0  ;;  %v2891_v35 = vld [vmem:[%s5718_s2 + $0x348] sm:$0xff] }
 0x191   :  { %v1906_v12 = vadd.f32 %v1905_v3, %v1904_v51  ;;  %v2889_v3 = vld [vmem:[%s5718_s2 + $0x338] sm:$0xff] }
 0x193   :  { %v2004_v1 = vpop.permute.xlu1 %2003  ;;  %v5471_v60 = vadd.f32 %v1906_v12, %v5261_v26  ;;  %v1999_v31 = vpop.permute.xlu0 %1998  ;;  %v5734_v26 = vld [vmem:[#allocation6_spill] sm:$0xff] }
 0x194   :  { %v5474_v0 = vadd.f32 %v5054_v39, %v2004_v1  ;;  %3204 = vperm.xlu1 %3762, %v2885_v38   ;;  %v5477_v41 = vadd.f32 %v5733_v6, %v1999_v31  ;;  %2925 = vperm.xlu0 %3761, %v2871_v62   ;;  %v2875_v12 = vld [vmem:[%s5717_s1 + $0x348] sm:$0xff]  ;;  %v5528_v38 = vpop.f32.mrb[49].mxu0  ;;  %v2229_v62 = vmax.f32 %v5414_v10, 0.0  ;;  %v2231_v10 = vmax.f32 %v5430_v59, 0.0  ;;  %v2877_v59 = vld [vmem:[%s5717_s1 + $0x358] sm:$0xff] }
 0x197   :  { %v2014_v16 = vpop.permute.xlu1 %2013  ;;  %v2009_v39 = vpop.permute.xlu0 %2008 }
 0x198   :  { %v5486_v25 = vadd.f32 %v5734_v26, %v2014_v16  ;;  %3209 = vperm.xlu1 %3762, %v2886_v2   ;;  %v5489_v58 = vadd.f32 %v5735_v29, %v2009_v39  ;;  %2930 = vperm.xlu0 %3761, %v2872_v18   ;;  %v2890_v2 = vld [vmem:[%s5718_s2 + $0x340] sm:$0xff]  ;;  %v2876_v16 = vld [vmem:[%s5717_s1 + $0x350] sm:$0xff] }
 0x19b   :  { %v2024_v15 = vpop.permute.xlu1 %2023  ;;  %v2019_v37 = vpop.permute.xlu0 %2018 }
 0x19c   :  { %v5502_v44 = vadd.f32 %v5736_v19, %v2024_v15  ;;  %3214 = vperm.xlu1 %3762, %v2887_v28   ;;  %v5505_v22 = vadd.f32 %v5737_v47, %v2019_v37  ;;  %2935 = vperm.xlu0 %3761, %v2873_v57   ;;  %v5544_v19 = vpop.f32.mrb[50].mxu0  ;;  %v2234_v37 = vmax.f32 %v5443_v42, 0.0  ;;  %v2892_v42 = vld [vmem:[%s5718_s2 + $0x350] sm:$0xff] }
 0x19d   :  { %v5550_v47 = vpop.f32.mrb[51].mxu0 }
 0x19f   :  { %v2034_v24 = vpop.permute.xlu1 %2033  ;;  %v2029_v30 = vpop.permute.xlu0 %2028 }
 0x1a0   :  { %v5514_v51 = vadd.f32 %v5738_v20, %v2034_v24  ;;  %3219 = vperm.xlu1 %3762, %v2888_v21   ;;  %v5517_v54 = vadd.f32 %v5124_v52, %v2029_v30  ;;  %2940 = vperm.xlu0 %3761, %v2874_v9   ;;  %v2233_v21 = vmax.f32 %v5446_v45, 0.0  ;;  %v2878_v45 = vld [vmem:[%s5717_s1 + $0x360] sm:$0xff] }
 0x1a3   :  { %v2253_v1 = vpop.permute.xlu1 %2252  ;;  %v2248_v31 = vpop.permute.xlu0 %2247 }
 0x1a4   :  { %v2326_v52 = vmul.f32 %v2253_v1, %v2230_v49  ;;  %3224 = vperm.xlu1 %3762, %v2889_v3   ;;  %v2325_v6 = vmul.f32 %v2248_v31, %v2229_v62  ;;  %2945 = vperm.xlu0 %3761, %v2875_v12   ;;  %v2236_v62 = vmax.f32 %v5455_v23, 0.0  ;;  %v2893_v23 = vld [vmem:[%s5718_s2 + $0x358] sm:$0xff] }
 0x1a6   :  { %v2342_v18 = vsel %vm456_vm1, %v2326_v52, 0.0  ;;  %v2341_v26 = vsel %vm456_vm1, %v2325_v6, 0.0  ;;  %v2235_v52 = vmax.f32 %v5458_v8, 0.0 }
 0x1a7   :  { %v2263_v39 = vpop.permute.xlu1 %2262  ;;  %v2343_v29 = vadd.f32 %v2342_v18, %v2341_v26  ;;  %v2258_v57 = vpop.permute.xlu0 %2257 }
 0x1a8   :  { %v2328_v28 = vmul.f32 %v2263_v39, %v2232_v27  ;;  %3229 = vperm.xlu1 %3762, %v2890_v2   ;;  %v2327_v15 = vmul.f32 %v2258_v57, %v2231_v10  ;;  %2950 = vperm.xlu0 %3761, %v2876_v16   ;;  %v5568_v26 = vpop.f32.mrb[52].mxu0  ;;  %v2238_v39 = vmax.f32 %v5474_v0, 0.0  ;;  %v2237_v57 = vmax.f32 %v5477_v41, 0.0  ;;  %v2894_v0 = vld [vmem:[%s5718_s2 + $0x360] sm:$0xff]  ;;  %v2880_v41 = vld [vmem:[%s5717_s1 + $0x370] sm:$0xff] }
 0x1aa   :  { %v2344_v9 = vsel %vm456_vm1, %v2327_v15, 0.0  ;;  %v2346_v49 = vsel %vm456_vm1, %v2328_v28, 0.0  ;;  %v5574_v28 = vpop.f32.mrb[53].mxu0 }
 0x1ab   :  { %v2273_v24 = vpop.permute.xlu1 %2272  ;;  %v2345_v20 = vadd.f32 %v2344_v9, %v2343_v29  ;;  %v2268_v3 = vpop.permute.xlu0 %2267  ;;  %v2879_v29 = vld [vmem:[%s5717_s1 + $0x368] sm:$0xff] }
 0x1ac   :  { %v2330_v30 = vmul.f32 %v2273_v24, %v2234_v37  ;;  %3234 = vperm.xlu1 %3762, %v2891_v35   ;;  %v2329_v12 = vmul.f32 %v2268_v3, %v2233_v21  ;;  %2955 = vperm.xlu0 %3761, %v2877_v59   ;;  %v2239_v3 = vmax.f32 %v5489_v58, 0.0 }
 0x1ad   :  { %v2347_v1 = vadd.f32 %v2346_v49, %v2345_v20  ;;  %v2240_v20 = vmax.f32 %v5486_v25, 0.0  ;;  %v2895_v25 = vld [vmem:[%s5718_s2 + $0x368] sm:$0xff] }
 0x1ae   :  { %v2348_v31 = vsel %vm456_vm1, %v2329_v12, 0.0  ;;  %v2350_v16 = vsel %vm456_vm1, %v2330_v30, 0.0 }
 0x1af   :  { %v2283_v6 = vpop.permute.xlu1 %2282  ;;  %v2349_v2 = vadd.f32 %v2348_v31, %v2347_v1  ;;  %v2278_v18 = vpop.permute.xlu0 %2277 }
 0x1b0   :  { %v2332_v27 = vmul.f32 %v2283_v6, %v2236_v62  ;;  %3239 = vperm.xlu1 %3762, %v2892_v42   ;;  %v2331_v10 = vmul.f32 %v2278_v18, %v2235_v52  ;;  %2960 = vperm.xlu0 %3761, %v2878_v45   ;;  %v2242_v6 = vmax.f32 %v5502_v44, 0.0  ;;  %v2241_v18 = vmax.f32 %v5505_v22, 0.0  ;;  %v2897_v44 = vld [vmem:[%s5718_s2 + $0x378] sm:$0xff]  ;;  %v2896_v22 = vld [vmem:[%s5718_s2 + $0x370] sm:$0xff]  ;;  %s3788_s2 = smov [#allocation2]  }
 0x1b1   :  { %v2351_v8 = vadd.f32 %v2350_v16, %v2349_v2  ;;  %v2881_v2 = vld [vmem:[%s5717_s1 + $0x378] sm:$0xff]  ;;  %s3329_s5 = sshll.u32 %s3788_s2, 4  ;;  %s3330_s5 = int_to_ptr.vmem [resolvable:$true] %s3329_s5 }
 0x1b2   :  { %v2352_v15 = vsel %vm456_vm1, %v2331_v10, 0.0  ;;  %v2354_v9 = vsel %vm456_vm1, %v2332_v27, 0.0  ;;  %s3763_s6 = scalar_lea.vmem %s3330_s5, 16  ;;  %s3767_s7 = scalar_lea.vmem %s3330_s5, 32 }
 0x1b3   :  { %v2293_v35 = vpop.permute.xlu1 %2292  ;;  %v2353_v37 = vadd.f32 %v2352_v15, %v2351_v8  ;;  %v2288_v21 = vpop.permute.xlu0 %2287  ;;  %v2244_v15 = vmax.f32 %v5514_v51, 0.0  ;;  %p3764_p0 = scmp.ne.s32.totalorder %s3330_s5, %s3763_s6  ;;  %p3768_p1 = scmp.lt.s32.totalorder %s3330_s5, %s3330_s5 }
 0x1b4   :  { %v2334_v59 = vmul.f32 %v2293_v35, %v2238_v39  ;;  %3244 = vperm.xlu1 %3762, %v2893_v23   ;;  %v2333_v24 = vmul.f32 %v2288_v21, %v2237_v57  ;;  %2965 = vperm.xlu0 %3761, %v2879_v29   ;;  %p3769_p2 = scmp.lt.s32.totalorder %s3767_s7, %s3763_s6 }
 0x1b5   :  { %v2355_v30 = vadd.f32 %v2354_v9, %v2353_v37  ;;  %v2243_v37 = vmax.f32 %v5517_v54, 0.0 }
 0x1b6   :  { %v2356_v49 = vsel %vm456_vm1, %v2333_v24, 0.0  ;;  %v2358_v45 = vsel %vm456_vm1, %v2334_v59, 0.0  ;;  %p3770_p3 = por %p3769_p2, %p3768_p1 }
 0x1b7   :  { %v2303_v12 = vpop.permute.xlu1 %2302  ;;  %v2357_v42 = vadd.f32 %v2356_v49, %v2355_v30  ;;  %v2298_v1 = vpop.permute.xlu0 %2297 }
 0x1b8   :  { %v2336_v62 = vmul.f32 %v2303_v12, %v2240_v20  ;;  %3249 = vperm.xlu1 %3762, %v2894_v0   ;;  %v2335_v52 = vmul.f32 %v2298_v1, %v2239_v3  ;;  %2970 = vperm.xlu0 %3761, %v2880_v41   ;;  %v5592_v31 = vpop.f32.mrb[54].mxu0  ;;  %p3771_p4 = pnand %p3770_p3, %p3764_p0 }
 0x1b9   :  { %v2359_v58 = vadd.f32 %v2358_v45, %v2357_v42  ;;  %v5598_v27 = vpop.f32.mrb[55].mxu0 }
 0x1ba   :  { %v2360_v16 = vsel %vm456_vm1, %v2335_v52, 0.0  ;;  %v2362_v29 = vsel %vm456_vm1, %v2336_v62, 0.0 }
 0x1bb   :  { %v2313_v10 = vpop.permute.xlu1 %2312  ;;  %v2361_v23 = vadd.f32 %v2360_v16, %v2359_v58  ;;  %v2308_v8 = vpop.permute.xlu0 %2307 }
 0x1bc   :  { %v2338_v39 = vmul.f32 %v2313_v10, %v2242_v6  ;;  %3254 = vperm.xlu1 %3762, %v2895_v25   ;;  %v2337_v57 = vmul.f32 %v2308_v8, %v2241_v18  ;;  %2975 = vperm.xlu0 %3761, %v2881_v2  }
 0x1bd   :  { %v2363_v35 = vadd.f32 %v2362_v29, %v2361_v23 }
 0x1be   :  { %v2364_v59 = vsel %vm456_vm1, %v2337_v57, 0.0  ;;  %v2366_v20 = vsel %vm456_vm1, %v2338_v39, 0.0 }
 0x1bf   :  { %v2323_v21 = vpop.permute.xlu1 %2322  ;;  %v2365_v9 = vadd.f32 %v2364_v59, %v2363_v35  ;;  %v2318_v0 = vpop.permute.xlu0 %2317 }
 0x1c0   :  { %v2340_v24 = vmul.f32 %v2323_v21, %v2244_v15  ;;  %3264 = vperm.xlu1 %3762, %v2897_v44   ;;  %v2339_v30 = vmul.f32 %v2318_v0, %v2243_v37  ;;  %3259 = vperm.xlu0 %3761, %v2896_v22  }
 0x1c1   :  { %v2367_v41 = vadd.f32 %v2366_v20, %v2365_v9  ;;  %v5741_v20 = vld [vmem:[#allocation13_spill] sm:$0xff] }
 0x1c2   :  { %v2368_v51 = vsel %vm456_vm1, %v2339_v30, 0.0  ;;  %v2370_v54 = vsel %vm456_vm1, %v2340_v24, 0.0 }
 0x1c3   :  { %v2435_v3 = vpop.permute.xlu1 %2434  ;;  %v2369_v49 = vadd.f32 %v2368_v51, %v2367_v41  ;;  %v2430_v42 = vpop.permute.xlu0 %2429  ;;  %v5742_v41 = vld [vmem:[#allocation14_spill] sm:$0xff] }
 0x1c4   :  { %v2627_v12 = vadd.f32 %v5209_v46, %v2435_v3  ;;  %v2622_v62 = vadd.f32 %v5214_v48, %v2430_v42 }
 0x1c5   :  { %v2371_v1 = vadd.f32 %v2370_v54, %v2369_v49 }
 0x1c6   :  { %v2701_v51 = vmax.f32 %v2627_v12, 0.0  ;;  %v2700_v3 = vmax.f32 %v2622_v62, 0.0 }
 0x1c7   :  { %v2445_v45 = vpop.permute.xlu1 %2444  ;;  %v2372_v52 = vrot.slane %v2371_v1, 4  ;;  %v2440_v6 = vpop.permute.xlu0 %2439 }
 0x1c8   :  { %v2637_v25 = vadd.f32 %v5221_v11, %v2445_v45  ;;  %v2632_v58 = vadd.f32 %v5226_v14, %v2440_v6 }
 0x1c9   :  { %v2373_v2 = vadd.f32 %v2372_v52, %v2371_v1 }
 0x1ca   :  { %v2703_v45 = vmax.f32 %v2637_v25, 0.0  ;;  %v2702_v52 = vmax.f32 %v2632_v58, 0.0 }
 0x1cb   :  { %v2455_v18 = vpop.permute.xlu1 %2454  ;;  %v2374_v16 = vrot.slane %v2373_v2, 2  ;;  %v2450_v23 = vpop.permute.xlu0 %2449 }
 0x1cc   :  { %v2647_v10 = vadd.f32 %v5235_v56, %v2455_v18  ;;  %v2642_v46 = vadd.f32 %v5240_v13, %v2450_v23 }
 0x1cd   :  { %v2375_v39 = vadd.f32 %v2374_v16, %v2373_v2 }
 0x1cf   :  { %v2465_v8 = vpop.permute.xlu1 %2464  ;;  %v2376_v29 = vrot.slane %v2375_v39, 1  ;;  %v2460_v57 = vpop.permute.xlu0 %2459 }
 0x1d0   :  { %v2657_v48 = vadd.f32 %v5249_v53, %v2465_v8  ;;  %v2652_v44 = vadd.f32 %v5254_v4, %v2460_v57  ;;  %v5739_v4 = vld [vmem:[#allocation11_spill] sm:$0xff]  ;;  %v2705_v8 = vmax.f32 %v2647_v10, 0.0 }
 0x1d1   :  { %v2377_v11 = vadd.f32 %v2376_v29, %v2375_v39  ;;  %v2704_v29 = vmax.f32 %v2642_v46, 0.0 }
 0x1d2   :  { %v2707_v58 = vmax.f32 %v2657_v48, 0.0 }
 0x1d3   :  { %v2475_v15 = vpop.permute.xlu1 %2474  ;;  %v2470_v35 = vpop.permute.xlu0 %2469  ;;  %v5625_v22 = vadd.f32 %v2377_v11, %v5471_v60 }
 0x1d4   :  { %v2667_v14 = vadd.f32 %v5266_v33, %v2475_v15  ;;  %v2662_v56 = vadd.f32 %v5271_v50, %v2470_v35  ;;  %v5740_v33 = vld [vmem:[#allocation12_spill] sm:$0xff] }
 0x1d7   :  { %v2485_v37 = vpop.permute.xlu1 %2484  ;;  %v2480_v59 = vpop.permute.xlu0 %2479 }
 0x1d8   :  { %v5629_v13 = vadd.f32 %v5280_v34, %v2485_v37  ;;  %v5632_v53 = vadd.f32 %v5285_v55, %v2480_v59  ;;  %v2706_v59 = vmax.f32 %v2652_v44, 0.0 }
 0x1db   :  { %v2495_v21 = vpop.permute.xlu1 %2494  ;;  %v2490_v24 = vpop.permute.xlu0 %2489 }
 0x1dc   :  { %v5635_v9 = vadd.f32 %v5739_v4, %v2495_v21  ;;  %v5638_v0 = vadd.f32 %v5740_v33, %v2490_v24 }
 0x1df   :  { %v2505_v60 = vpop.permute.xlu1 %2504  ;;  %v2500_v50 = vpop.permute.xlu0 %2499 }
 0x1e0   :  { %v5641_v30 = vadd.f32 %v5741_v20, %v2505_v60  ;;  %v5644_v34 = vadd.f32 %v5742_v41, %v2500_v50  ;;  %v2709_v50 = vmax.f32 %v2667_v14, 0.0  ;;  %v2708_v41 = vmax.f32 %v2662_v56, 0.0 }
 0x1e3   :  { %v2724_v55 = vpop.permute.xlu1 %2723  ;;  %v2719_v42 = vpop.permute.xlu0 %2718 }
 0x1e4   :  { %v2797_v49 = vmul.f32 %v2724_v55, %v2701_v51  ;;  %v2796_v54 = vmul.f32 %v2719_v42, %v2700_v3 }
 0x1e6   :  { %v2813_v1 = vsel %vm456_vm1, %v2797_v49, 0.0  ;;  %v2812_v6 = vsel %vm456_vm1, %v2796_v54, 0.0 }
 0x1e7   :  { %v2734_v2 = vpop.permute.xlu1 %2733  ;;  %v2814_v18 = vadd.f32 %v2813_v1, %v2812_v6  ;;  %v2729_v16 = vpop.permute.xlu0 %2728  ;;  %v2711_v1 = vmax.f32 %v5629_v13, 0.0 }
 0x1e8   :  { %v2799_v23 = vmul.f32 %v2734_v2, %v2703_v45  ;;  %v2798_v39 = vmul.f32 %v2729_v16, %v2702_v52  ;;  %v2710_v45 = vmax.f32 %v5632_v53, 0.0 }
 0x1ea   :  { %v2815_v12 = vsel %vm456_vm1, %v2798_v39, 0.0  ;;  %v2817_v15 = vsel %vm456_vm1, %v2799_v23, 0.0  ;;  %v2713_v39 = vmax.f32 %v5635_v9, 0.0 }
 0x1eb   :  { %v2744_v62 = vpop.permute.xlu1 %2743  ;;  %v2816_v57 = vadd.f32 %v2815_v12, %v2814_v18  ;;  %v2739_v11 = vpop.permute.xlu0 %2738 }
 0x1ec   :  { %v2801_v35 = vmul.f32 %v2744_v62, %v2705_v8  ;;  %v2800_v37 = vmul.f32 %v2739_v11, %v2704_v29  ;;  %v2712_v8 = vmax.f32 %v5638_v0, 0.0 }
 0x1ed   :  { %v2818_v25 = vadd.f32 %v2817_v15, %v2816_v57 }
 0x1ee   :  { %v2819_v21 = vsel %vm456_vm1, %v2800_v37, 0.0  ;;  %v2821_v10 = vsel %vm456_vm1, %v2801_v35, 0.0  ;;  %v2715_v35 = vmax.f32 %v5641_v30, 0.0  ;;  %v2714_v37 = vmax.f32 %v5644_v34, 0.0 }
 0x1ef   :  { %v2754_v4 = vpop.permute.xlu1 %2753  ;;  %v2820_v24 = vadd.f32 %v2819_v21, %v2818_v25  ;;  %v2749_v33 = vpop.permute.xlu0 %2748 }
 0x1f0   :  { %v2803_v46 = vmul.f32 %v2754_v4, %v2707_v58  ;;  %v2802_v60 = vmul.f32 %v2749_v33, %v2706_v59 }
 0x1f1   :  { %v2822_v20 = vadd.f32 %v2821_v10, %v2820_v24 }
 0x1f2   :  { %v2823_v51 = vsel %vm456_vm1, %v2802_v60, 0.0  ;;  %v2825_v48 = vsel %vm456_vm1, %v2803_v46, 0.0 }
 0x1f3   :  { %v2764_v3 = vpop.permute.xlu1 %2763  ;;  %v2824_v55 = vadd.f32 %v2823_v51, %v2822_v20  ;;  %v2759_v49 = vpop.permute.xlu0 %2758 }
 0x1f4   :  { %v2805_v44 = vmul.f32 %v2764_v3, %v2709_v50  ;;  %v2804_v42 = vmul.f32 %v2759_v49, %v2708_v41 }
 0x1f5   :  { %v2826_v54 = vadd.f32 %v2825_v48, %v2824_v55 }
 0x1f6   :  { %v2827_v52 = vsel %vm456_vm1, %v2804_v42, 0.0  ;;  %v2829_v56 = vsel %vm456_vm1, %v2805_v44, 0.0 }
 0x1f7   :  { %v2774_v6 = vpop.permute.xlu1 %2773  ;;  %v2828_v2 = vadd.f32 %v2827_v52, %v2826_v54  ;;  %v2769_v14 = vpop.permute.xlu0 %2768 }
 0x1f8   :  { %v2807_v18 = vmul.f32 %v2774_v6, %v2711_v1  ;;  %v2806_v16 = vmul.f32 %v2769_v14, %v2710_v45 }
 0x1f9   :  { %v2830_v23 = vadd.f32 %v2829_v56, %v2828_v2 }
 0x1fa   :  { %v2831_v29 = vsel %vm456_vm1, %v2806_v16, 0.0  ;;  %v2833_v53 = vsel %vm456_vm1, %v2807_v18, 0.0 }
 0x1fb   :  { %v2784_v12 = vpop.permute.xlu1 %2783  ;;  %v2832_v13 = vadd.f32 %v2831_v29, %v2830_v23  ;;  %v2779_v62 = vpop.permute.xlu0 %2778 }
 0x1fc   :  { %v2809_v57 = vmul.f32 %v2784_v12, %v2713_v39  ;;  %v2808_v11 = vmul.f32 %v2779_v62, %v2712_v8 }
 0x1fd   :  { %v2834_v15 = vadd.f32 %v2833_v53, %v2832_v13 }
 0x1fe   :  { %v2835_v25 = vsel %vm456_vm1, %v2808_v11, 0.0  ;;  %v2837_v0 = vsel %vm456_vm1, %v2809_v57, 0.0 }
 0x1ff   :  { %v2794_v58 = vpop.permute.xlu1 %2793  ;;  %v2836_v9 = vadd.f32 %v2835_v25, %v2834_v15  ;;  %v2789_v59 = vpop.permute.xlu0 %2788 }
 0x200   :  { %v2811_v21 = vmul.f32 %v2794_v58, %v2715_v35  ;;  %v2810_v4 = vmul.f32 %v2789_v59, %v2714_v37 }
 0x201   :  { %v2838_v24 = vadd.f32 %v2837_v0, %v2836_v9 }
 0x202   :  { %v2839_v33 = vsel %vm456_vm1, %v2810_v4, 0.0  ;;  %v2841_v20 = vsel %vm456_vm1, %v2811_v21, 0.0 }
 0x203   :  { %v2906_v10 = vpop.permute.xlu1 %2905  ;;  %v2840_v46 = vadd.f32 %v2839_v33, %v2838_v24  ;;  %v2901_v60 = vpop.permute.xlu0 %2900 }
 0x204   :  { %v3098_v34 = vadd.f32 %v5419_v40, %v2906_v10  ;;  %v3093_v50 = vadd.f32 %v5424_v63, %v2901_v60 }
 0x205   :  { %v2842_v30 = vadd.f32 %v2841_v20, %v2840_v46 }
 0x206   :  { %v3172_v49 = vmax.f32 %v3098_v34, 0.0  ;;  %v3171_v44 = vmax.f32 %v3093_v50, 0.0 }
 0x207   :  { %v2916_v41 = vpop.permute.xlu1 %2915  ;;  %v2843_v51 = vrot.slane %v2842_v30, 4  ;;  %v2911_v3 = vpop.permute.xlu0 %2910 }
 0x208   :  { %v3103_v48 = vadd.f32 %v5440_v17, %v2911_v3  ;;  %v3108_v2 = vadd.f32 %v5435_v43, %v2916_v41 }
 0x209   :  { %v2844_v55 = vadd.f32 %v2843_v51, %v2842_v30 }
 0x20a   :  { %v3173_v14 = vmax.f32 %v3103_v48, 0.0  ;;  %v3174_v17 = vmax.f32 %v3108_v2, 0.0 }
 0x20b   :  { %v3195_v42 = vpop.permute.xlu1 %3194  ;;  %v2845_v54 = vrot.slane %v2844_v55, 2  ;;  %v3190_v45 = vpop.permute.xlu0 %3189 }
 0x20c   :  { %v3268_v1 = vmul.f32 %v3195_v42, %v3172_v49  ;;  %v3267_v52 = vmul.f32 %v3190_v45, %v3171_v44 }
 0x20d   :  { %v2846_v6 = vadd.f32 %v2845_v54, %v2844_v55 }
 0x20e   :  { %v3284_v40 = vsel %vm456_vm1, %v3268_v1, 0.0  ;;  %v3283_v63 = vsel %vm456_vm1, %v3267_v52, 0.0 }
 0x20f   :  { %v3200_v56 = vpop.permute.xlu1 %3199  ;;  %v3285_v18 = vadd.f32 %v3284_v40, %v3283_v63  ;;  %v2921_v23 = vpop.permute.xlu0 %2920  ;;  %v2847_v39 = vrot.slane %v2846_v6, 1 }
 0x210   :  { %v3269_v16 = vmul.f32 %v3200_v56, %v3173_v14  ;;  %v3113_v29 = vadd.f32 %v5468_v7, %v2921_v23 }
 0x211   :  { %v2848_v12 = vadd.f32 %v2847_v39, %v2846_v6 }
 0x212   :  { %v3286_v8 = vsel %vm456_vm1, %v3269_v16, 0.0  ;;  %v3175_v11 = vmax.f32 %v3113_v29, 0.0 }
 0x213   :  { %v3287_v13 = vadd.f32 %v3286_v8, %v3285_v18  ;;  %v3205_v62 = vpop.permute.xlu1 %3204  ;;  %v2926_v43 = vpop.permute.xlu0 %2925  ;;  %v5677_v57 = vadd.f32 %v2848_v12, %v5625_v22 }
 0x214   :  { %v3270_v53 = vmul.f32 %v3205_v62, %v3174_v17  ;;  %v3118_v35 = vadd.f32 %v5463_v5, %v2926_v43 }
 0x216   :  { %v3288_v15 = vsel %vm456_vm1, %v3270_v53, 0.0  ;;  %v3176_v59 = vmax.f32 %v3118_v35, 0.0 }
 0x217   :  { %v3289_v37 = vadd.f32 %v3288_v15, %v3287_v13  ;;  %v3210_v25 = vpop.permute.xlu1 %3209  ;;  %v2931_v9 = vpop.permute.xlu0 %2930 }
 0x218   :  { %v3271_v58 = vmul.f32 %v3210_v25, %v3175_v11  ;;  %v3123_v0 = vadd.f32 %v5499_v32, %v2931_v9 }
 0x21a   :  { %v3290_v7 = vsel %vm456_vm1, %v3271_v58, 0.0  ;;  %v3177_v22 = vmax.f32 %v3123_v0, 0.0 }
 0x21b   :  { %v3291_v21 = vadd.f32 %v3290_v7, %v3289_v37  ;;  %v3215_v4 = vpop.permute.xlu1 %3214  ;;  %v2936_v33 = vpop.permute.xlu0 %2935 }
 0x21c   :  { %v3272_v24 = vmul.f32 %v3215_v4, %v3176_v59  ;;  %v3128_v46 = vadd.f32 %v5494_v36, %v2936_v33 }
 0x21e   :  { %v3292_v10 = vsel %vm456_vm1, %v3272_v24, 0.0  ;;  %v3178_v34 = vmax.f32 %v3128_v46, 0.0 }
 0x21f   :  { %v3293_v60 = vadd.f32 %v3292_v10, %v3291_v21  ;;  %v3220_v5 = vpop.permute.xlu1 %3219  ;;  %v2941_v30 = vpop.permute.xlu0 %2940 }
 0x220   :  { %v3273_v20 = vmul.f32 %v3220_v5, %v3177_v22  ;;  %v3133_v41 = vadd.f32 %v5528_v38, %v2941_v30 }
 0x222   :  { %v3294_v50 = vsel %vm456_vm1, %v3273_v20, 0.0  ;;  %v3179_v49 = vmax.f32 %v3133_v41, 0.0 }
 0x223   :  { %v3295_v51 = vadd.f32 %v3294_v50, %v3293_v60  ;;  %v3225_v32 = vpop.permute.xlu1 %3224  ;;  %v2946_v55 = vpop.permute.xlu0 %2945 }
 0x224   :  { %v3274_v3 = vmul.f32 %v3225_v32, %v3178_v34  ;;  %v3138_v44 = vadd.f32 %v5522_v61, %v2946_v55 }
 0x226   :  { %v3296_v48 = vsel %vm456_vm1, %v3274_v3, 0.0  ;;  %v3180_v45 = vmax.f32 %v3138_v44, 0.0 }
 0x227   :  { %v3297_v42 = vadd.f32 %v3296_v48, %v3295_v51  ;;  %v3230_v36 = vpop.permute.xlu1 %3229  ;;  %v2951_v1 = vpop.permute.xlu0 %2950 }
 0x228   :  { %v3275_v54 = vmul.f32 %v3230_v36, %v3179_v49  ;;  %v3143_v6 = vadd.f32 %v5550_v47, %v2951_v1 }
 0x22a   :  { %v3298_v52 = vsel %vm456_vm1, %v3275_v54, 0.0  ;;  %v3181_v63 = vmax.f32 %v3143_v6, 0.0 }
 0x22b   :  { %v3299_v2 = vadd.f32 %v3298_v52, %v3297_v42  ;;  %v3235_v38 = vpop.permute.xlu1 %3234  ;;  %v2956_v40 = vpop.permute.xlu0 %2955 }
 0x22c   :  { %v3276_v14 = vmul.f32 %v3235_v38, %v3180_v45  ;;  %v3148_v18 = vadd.f32 %v5544_v19, %v2956_v40 }
 0x22e   :  { %v3300_v56 = vsel %vm456_vm1, %v3276_v14, 0.0  ;;  %v3182_v17 = vmax.f32 %v3148_v18, 0.0 }
 0x22f   :  { %v3301_v16 = vadd.f32 %v3300_v56, %v3299_v2  ;;  %v3240_v61 = vpop.permute.xlu1 %3239  ;;  %v2961_v39 = vpop.permute.xlu0 %2960 }
 0x230   :  { %v3277_v23 = vmul.f32 %v3240_v61, %v3181_v63  ;;  %v3153_v29 = vadd.f32 %v5574_v28, %v2961_v39 }
 0x232   :  { %v3302_v8 = vsel %vm456_vm1, %v3277_v23, 0.0  ;;  %v3183_v53 = vmax.f32 %v3153_v29, 0.0 }
 0x233   :  { %v3303_v12 = vadd.f32 %v3302_v8, %v3301_v16  ;;  %v3245_v47 = vpop.permute.xlu1 %3244  ;;  %v2966_v62 = vpop.permute.xlu0 %2965 }
 0x234   :  { %v3278_v13 = vmul.f32 %v3245_v47, %v3182_v17  ;;  %v3158_v11 = vadd.f32 %v5568_v26, %v2966_v62 }
 0x236   :  { %v3304_v43 = vsel %vm456_vm1, %v3278_v13, 0.0  ;;  %v3184_v25 = vmax.f32 %v3158_v11, 0.0 }
 0x237   :  { %v3305_v15 = vadd.f32 %v3304_v43, %v3303_v12  ;;  %v3250_v19 = vpop.permute.xlu1 %3249  ;;  %v2971_v37 = vpop.permute.xlu0 %2970 }
 0x238   :  { %v3279_v35 = vmul.f32 %v3250_v19, %v3183_v53  ;;  %v3163_v59 = vadd.f32 %v5598_v27, %v2971_v37 }
 0x23a   :  { %v3306_v58 = vsel %vm456_vm1, %v3279_v35, 0.0  ;;  %v3185_v24 = vmax.f32 %v3163_v59, 0.0 }
 0x23b   :  { %v3307_v9 = vadd.f32 %v3306_v58, %v3305_v15  ;;  %v3255_v28 = vpop.permute.xlu1 %3254  ;;  %v2976_v0 = vpop.permute.xlu0 %2975 }
 0x23c   :  { %v3280_v7 = vmul.f32 %v3255_v28, %v3184_v25  ;;  %v3168_v21 = vadd.f32 %v5592_v31, %v2976_v0 }
 0x23e   :  { %v3308_v4 = vsel %vm456_vm1, %v3280_v7, 0.0  ;;  %v3186_v26 = vmax.f32 %v3168_v21, 0.0 }
 0x23f   :  { %v3309_v33 = vadd.f32 %v3308_v4, %v3307_v9  ;;  %v3265_v22 = vpop.permute.xlu1 %3264  ;;  %v3260_v10 = vpop.permute.xlu0 %3259 }
 0x240   :  { %v3282_v46 = vmul.f32 %v3265_v22, %v3186_v26  ;;  %v3281_v60 = vmul.f32 %v3260_v10, %v3185_v24 }
 0x242   :  { %v3310_v5 = vsel %vm456_vm1, %v3281_v60, 0.0  ;;  %v3312_v30 = vsel %vm456_vm1, %v3282_v46, 0.0 }
 0x243   :  { %v3311_v20 = vadd.f32 %v3310_v5, %v3309_v33 }
 0x245   :  { %v3313_v27 = vadd.f32 %v3312_v30, %v3311_v20 }
 0x247   :  { %v3314_v34 = vrot.slane %v3313_v27, 4 }
 0x249   :  { %v3315_v50 = vadd.f32 %v3314_v34, %v3313_v27 }
 0x24b   :  { %v3316_v41 = vrot.slane %v3315_v50, 2 }
 0x24d   :  { %v3317_v51 = vadd.f32 %v3316_v41, %v3315_v50 }
 0x24f   :  { %v3318_v31 = vrot.slane %v3317_v51, 1 }
 0x251   :  { %v3319_v32 = vadd.f32 %v3318_v31, %v3317_v51 }
 0x253   :  { %v3320_v3 = vadd.f32 %v3319_v32, %v5677_v57 }
 0x255   :  { %3322 = vst.msk [vmem:[#allocation2] sm:$0x1] %vm3321_vm2, %v3320_v3 }
 0x256   :  { %3774 = shalt.err (!%p3771_p4)
}
 0x257   :  { %s3775_s10 = scalar_lea.hbm %s5720_s4, 16 }
 0x258   :  { %p3776_p5 = scmp.ne.s32.totalorder %s5720_s4, %s3775_s10  ;;  %p3779_p6 = scmp.lt.u32.totalorder %s3775_s10, %s5720_s4 }
 0x25a   :  { %p3781_p7 = pnand %p3779_p6, %p3776_p5 }
 0x25c   :  { %3784 = shalt.err (!%p3781_p7)
}
 0x25d   :  { %3332 = dma.vmem_to_hbm [thread:$0]  %s3330_s5, 16, %s5720_s4, [#allocation3]  }
 0x25e   :  { %3785 = dma.done.wait [#allocation3], 16  }
 0x25f   :  { %3786 = vsyncadd [#allocation3], 4294967280 }
 0x260   :  { %3336 = vsyncpa [#allocation3], 1 }

</bundles_post_ra>
